<compile_context>
chip_gen: v6e
topology: v6e:2x2x1
jax: 0.10.0
libtpu: 0.0.40
codegen_flags: <defaults>
</compile_context>

<pallas_src>
import jax
import jax.numpy as jnp
from jax import lax
from jax.experimental import pallas as pl
from jax.experimental.pallas import tpu as pltpu


def _round_up(x, m):
    return ((x + m - 1) // m) * m


def _pick_time_chunk(seq, max_chunk=32):
    """Largest divisor of seq that is <= max_chunk (so grid tiles evenly)."""
    for c in range(min(seq, max_chunk), 0, -1):
        if seq % c == 0:
            return c
    return 1


def lstm_classifier_kernel(gx_ref, whh_ref, wfc_ref, bfc_ref,
                           out_ref, h_ref, c_ref):
    """gx_ref:  (T_CHUNK, B_pad, 4*H_pad)  precomputed x@W_ih + b for this chunk
       whh_ref: (H_pad, 4*H_pad)
       wfc_ref: (H_pad, O_pad)
       bfc_ref: (1, O_pad)
       out_ref: (B_pad, O_pad)
       h_ref/c_ref: (B_pad, H_pad) VMEM scratch, persistent across grid steps."""
    t = pl.program_id(0)

    @pl.when(t == 0)
    def _init():
        h_ref[...] = jnp.zeros_like(h_ref)
        c_ref[...] = jnp.zeros_like(c_ref)

    Hp = h_ref.shape[-1]
    T = gx_ref.shape[0]

    def step(j, carry):
        # gates = gates_x[t] + h_{t-1} @ W_hh   (B_pad, 4*H_pad)
        gates = gx_ref[j] + jnp.dot(h_ref[...], whh_ref[...],
                                    preferred_element_type=jnp.float32)
        # Lane-aligned gate slices (Hp is a multiple of 128).
        i = jax.nn.sigmoid(gates[:, 0 * Hp:1 * Hp])
        f = jax.nn.sigmoid(gates[:, 1 * Hp:2 * Hp])
        g = jnp.tanh(gates[:, 2 * Hp:3 * Hp])
        o = jax.nn.sigmoid(gates[:, 3 * Hp:4 * Hp])

        c_new = f * c_ref[...] + i * g
        h_new = o * jnp.tanh(c_new)
        c_ref[...] = c_new
        h_ref[...] = h_new
        return carry

    lax.fori_loop(0, T, step, 0, unroll=True)

    @pl.when(t == pl.num_programs(0) - 1)
    def _finalize():
        out_ref[...] = (jnp.dot(h_ref[...], wfc_ref[...],
                                preferred_element_type=jnp.float32)
                        + bfc_ref[...])


def _pad_gate_cols(w, H, Hp):
    """(..., 4*H) -> (..., 4*Hp) with per-gate zero padding (gate order kept)."""
    lead = w.shape[:-1]
    w4 = w.reshape(*lead, 4, H)
    w4 = jnp.pad(w4, [(0, 0)] * len(lead) + [(0, 0), (0, Hp - H)])
    return w4.reshape(*lead, 4 * Hp)


def lstm_classifier_forward(x_tokens, params):
    """x_tokens: (batch, seq) int32 token ids."""
    emb_table = params["embedding"]            # (vocab, E)
    w_ih = params["w_ih"]                      # (E, 4H)   (transposed vs PyTorch)
    w_hh = params["w_hh"]                      # (H, 4H)
    b = params["b"]                            # (1, 4H)   (= b_ih + b_hh)
    w_fc = params["w_fc"]                      # (H, O)
    b_fc = params["b_fc"]                      # (1, O)

    batch, seq = x_tokens.shape
    emb_dim = emb_table.shape[1]
    hidden = w_hh.shape[0]
    out_dim = w_fc.shape[1]

    # Tile-friendly padded sizes.
    Bp = _round_up(batch, 8)        # sublane count
    Hp = _round_up(hidden, 128)     # lane count -> lane-aligned gate slices
    Op = _round_up(out_dim, 128)    # unmasked final store

    # Pad gate-structured weights; padded hidden units have zero weights/bias,
    # so their state stays exactly zero and does not perturb real units.
    w_ih_p = _pad_gate_cols(w_ih, hidden, Hp)                       # (E, 4Hp)
    b_p = _pad_gate_cols(b, hidden, Hp)                             # (1, 4Hp)
    w_hh_p = _pad_gate_cols(w_hh, hidden, Hp)                       # (H, 4Hp)
    w_hh_p = jnp.pad(w_hh_p, ((0, Hp - hidden), (0, 0)))            # (Hp, 4Hp)
    w_fc_p = jnp.pad(w_fc, ((0, Hp - hidden), (0, Op - out_dim)))   # (Hp, Op)
    b_fc_p = jnp.pad(b_fc, ((0, 0), (0, Op - out_dim)))             # (1, Op)

    # Glue: embedding gather + hoisted input projection as ONE large matmul,
    # emitted directly in time-major layout (no separate transpose pass).
    embedded = emb_table[x_tokens]                                  # (B, S, E)
    gates_x = jnp.einsum("bse,eg->sbg", embedded, w_ih_p,
                         precision=lax.Precision.HIGHEST) + b_p     # (S, B, 4Hp)
    gates_x = jnp.pad(gates_x, ((0, 0), (0, Bp - batch), (0, 0)))   # (S, Bp, 4Hp)

    t_chunk = _pick_time_chunk(seq)
    grid = (seq // t_chunk,)

    out_p = pl.pallas_call(
        lstm_classifier_kernel,
        out_shape=jax.ShapeDtypeStruct((Bp, Op), jnp.float32),
        grid_spec=pltpu.PrefetchScalarGridSpec(
            num_scalar_prefetch=0,
            grid=grid,
            in_specs=[
                pl.BlockSpec((t_chunk, Bp, 4 * Hp), lambda t: (t, 0, 0)),
                pl.BlockSpec((Hp, 4 * Hp), lambda t: (0, 0)),
                pl.BlockSpec((Hp, Op), lambda t: (0, 0)),
                pl.BlockSpec((1, Op), lambda t: (0, 0)),
            ],
            out_specs=pl.BlockSpec((Bp, Op), lambda t: (0, 0)),
            scratch_shapes=[
                pltpu.VMEM((Bp, Hp), jnp.float32),   # h
                pltpu.VMEM((Bp, Hp), jnp.float32),   # c
            ],
        ),
        compiler_params=pltpu.CompilerParams(
            dimension_semantics=("arbitrary",),
            vmem_limit_bytes=64 * 1024 * 1024,
        ),
    )(gates_x, w_hh_p, w_fc_p, b_fc_p)

    # Strip padding -> logits identical to the unpadded model.
    return out_p[:batch, :out_dim]


def reference_forward(x_tokens, params):
    """Pure-JAX reference matching PyTorch nn.Embedding + nn.LSTM + nn.Linear."""
    emb = params["embedding"][x_tokens]                  # (B, S, E)
    w_ih, w_hh, b = params["w_ih"], params["w_hh"], params["b"]
    H = w_hh.shape[0]
    B = x_tokens.shape[0]

    def step(carry, x_t):
        h, c = carry
        gates = x_t @ w_ih + h @ w_hh + b[0]
        i = jax.nn.sigmoid(gates[:, :H])
        f = jax.nn.sigmoid(gates[:, H:2 * H])
        g = jnp.tanh(gates[:, 2 * H:3 * H])
        o = jax.nn.sigmoid(gates[:, 3 * H:])
        c = f * c + i * g
        h = o * jnp.tanh(c)
        return (h, c), h

    h0 = jnp.zeros((B, H), jnp.float32)
    c0 = jnp.zeros((B, H), jnp.float32)
    (h_last, _), _ = lax.scan(step, (h0, c0), jnp.transpose(emb, (1, 0, 2)))
    return h_last @ params["w_fc"] + params["b_fc"][0]


def make_params(vocab_size, embedding_dim, hidden_dim, output_dim, key):
    ks = jax.random.split(key, 7)
    scale = 0.1
    # PyTorch stores weight_ih_l0 as (4H, E); we keep the transposed (E, 4H) so the
    # kernel does x @ W. Same for weight_hh_l0 and fc.weight.
    return {
        "embedding": scale * jax.random.normal(ks[0], (vocab_size, embedding_dim), jnp.float32),
        "w_ih": scale * jax.random.normal(ks[1], (embedding_dim, 4 * hidden_dim), jnp.float32),
        "w_hh": scale * jax.random.normal(ks[2], (hidden_dim, 4 * hidden_dim), jnp.float32),
        # b = b_ih + b_hh (PyTorch has two bias vectors; they are always summed)
        "b": (scale * jax.random.normal(ks[3], (1, 4 * hidden_dim), jnp.float32)
              + scale * jax.random.normal(ks[4], (1, 4 * hidden_dim), jnp.float32)),
        "w_fc": scale * jax.random.normal(ks[5], (hidden_dim, output_dim), jnp.float32),
        "b_fc": scale * jax.random.normal(ks[6], (1, output_dim), jnp.float32),
    }


if __name__ == "__main__":
    vocab_size, embedding_dim, hidden_dim, output_dim = 32, 16, 32, 8
    batch, seq = 2, 8

    key = jax.random.PRNGKey(0)
    k_tok, k_par = jax.random.split(key)
    x_tokens = jax.random.randint(k_tok, (batch, seq), 0, vocab_size, dtype=jnp.int32)
    params = make_params(vocab_size, embedding_dim, hidden_dim, output_dim, k_par)

    out = lstm_classifier_forward(x_tokens, params)
    out = jax.block_until_ready(out)

    ref = reference_forward(x_tokens, params)
    assert out.shape == (batch, output_dim)
    assert jnp.allclose(out, ref, atol=1e-4, rtol=1e-4), "mismatch vs. reference"

    print("KERNEL_OK")
</pallas_src>

<mosaic_0001>
module attributes {stable_mosaic.version = 11 : i64} {
  func.func @lstm_classifier_kernel(%arg0: i32, %arg1: memref<8x8x512xf32, #tpu.memory_space<vmem>>, %arg2: memref<128x512xf32, #tpu.memory_space<vmem>>, %arg3: memref<128x128xf32, #tpu.memory_space<vmem>>, %arg4: memref<1x128xf32, #tpu.memory_space<vmem>>, %arg5: memref<8x128xf32, #tpu.memory_space<vmem>>, %arg6: memref<8x128xf32, #tpu.memory_space<vmem>>, %arg7: memref<8x128xf32, #tpu.memory_space<vmem>>) attributes {dimension_semantics = [#tpu.dimension_semantics<arbitrary>], iteration_bounds = array<i64: 1>, scalar_prefetch = 0 : i64, scratch_operands = 2 : i64, tpu.core_type = #tpu.core_type<tc>, window_params = [{transform_indices = @transform_0, window_bounds = array<i64: 8, 8, 512>}, {pipeline_mode = #tpu.pipeline_mode<synchronous>, transform_indices = @transform_1, window_bounds = array<i64: 128, 512>}, {pipeline_mode = #tpu.pipeline_mode<synchronous>, transform_indices = @transform_2, window_bounds = array<i64: 128, 128>}, {pipeline_mode = #tpu.pipeline_mode<synchronous>, transform_indices = @transform_3, window_bounds = array<i64: 1, 128>}, {pipeline_mode = #tpu.pipeline_mode<synchronous>, transform_indices = @transform_4, window_bounds = array<i64: 8, 128>}]} {
    %c0_i32 = arith.constant 0 : i32
    %0 = arith.cmpi eq, %arg0, %c0_i32 : i32
    %1 = arith.extui %0 : i1 to i32
    %c0_i32_0 = arith.constant 0 : i32
    %2 = arith.cmpi ne, %1, %c0_i32_0 : i32
    scf.if %2 {
      %cst_130 = arith.constant 0.000000e+00 : f32
      %286 = vector.broadcast %cst_130 : f32 to vector<8x128xf32>
      %c0_131 = arith.constant 0 : index
      %c0_132 = arith.constant 0 : index
      %287 = vector.load %arg6[%c0_131, %c0_132] : memref<8x128xf32, #tpu.memory_space<vmem>>, vector<8x128xf32>
      tpu.vector_store %arg6[%c0_131, %c0_132], %286 {strides = array<i32>} : memref<8x128xf32, #tpu.memory_space<vmem>>, vector<8x128xf32>,
      %cst_133 = arith.constant 0.000000e+00 : f32
      %288 = vector.broadcast %cst_133 : f32 to vector<8x128xf32>
      %c0_134 = arith.constant 0 : index
      %c0_135 = arith.constant 0 : index
      %289 = vector.load %arg7[%c0_134, %c0_135] : memref<8x128xf32, #tpu.memory_space<vmem>>, vector<8x128xf32>
      tpu.vector_store %arg7[%c0_134, %c0_135], %288 {strides = array<i32>} : memref<8x128xf32, #tpu.memory_space<vmem>>, vector<8x128xf32>,
    } else {
    }
    %c0_i32_1 = arith.constant 0 : i32
    %3 = arith.index_cast %c0_i32_1 : i32 to index
    %c0 = arith.constant 0 : index
    %c0_2 = arith.constant 0 : index
    %4 = vector.load %arg1[%3, %c0, %c0_2] : memref<8x8x512xf32, #tpu.memory_space<vmem>>, vector<1x8x512xf32>
    %5 = vector.shape_cast %4 : vector<1x8x512xf32> to vector<8x512xf32>
    %c0_3 = arith.constant 0 : index
    %c0_4 = arith.constant 0 : index
    %6 = vector.load %arg6[%c0_3, %c0_4] : memref<8x128xf32, #tpu.memory_space<vmem>>, vector<8x128xf32>
    %c0_5 = arith.constant 0 : index
    %c0_6 = arith.constant 0 : index
    %7 = vector.load %arg2[%c0_5, %c0_6] : memref<128x512xf32, #tpu.memory_space<vmem>>, vector<128x512xf32>
    %cst = arith.constant dense<0.000000e+00> : vector<8x512xf32>
    %8 = tpu.matmul %6, %7, %cst {dimension_numbers = #tpu.dot_dimension_numbers<[1], [0], [0], [1], [0, 0, 1, 1], [], []>} : vector<8x128xf32>, vector<128x512xf32>, vector<8x512xf32> -> vector<8x512xf32>
    %9 = arith.addf %5, %8 : vector<8x512xf32>
    %10 = vector.extract_strided_slice %9 {offsets = [0, 0], sizes = [8, 128], strides = [1, 1]} : vector<8x512xf32> to vector<8x128xf32>
    %11 = arith.negf %10 : vector<8x128xf32>
    %12 = math.exp %11 : vector<8x128xf32>
    %cst_7 = arith.constant 1.000000e+00 : f32
    %13 = vector.broadcast %cst_7 : f32 to vector<8x128xf32>
    %14 = arith.addf %13, %12 : vector<8x128xf32>
    %15 = arith.divf %13, %14 : vector<8x128xf32>
    %16 = vector.extract_strided_slice %9 {offsets = [0, 128], sizes = [8, 128], strides = [1, 1]} : vector<8x512xf32> to vector<8x128xf32>
    %17 = arith.negf %16 : vector<8x128xf32>
    %18 = math.exp %17 : vector<8x128xf32>
    %cst_8 = arith.constant 1.000000e+00 : f32
    %19 = vector.broadcast %cst_8 : f32 to vector<8x128xf32>
    %20 = arith.addf %19, %18 : vector<8x128xf32>
    %21 = arith.divf %19, %20 : vector<8x128xf32>
    %22 = vector.extract_strided_slice %9 {offsets = [0, 256], sizes = [8, 128], strides = [1, 1]} : vector<8x512xf32> to vector<8x128xf32>
    %23 = math.tanh %22 : vector<8x128xf32>
    %24 = vector.extract_strided_slice %9 {offsets = [0, 384], sizes = [8, 128], strides = [1, 1]} : vector<8x512xf32> to vector<8x128xf32>
    %25 = arith.negf %24 : vector<8x128xf32>
    %26 = math.exp %25 : vector<8x128xf32>
    %cst_9 = arith.constant 1.000000e+00 : f32
    %27 = vector.broadcast %cst_9 : f32 to vector<8x128xf32>
    %28 = arith.addf %27, %26 : vector<8x128xf32>
    %29 = arith.divf %27, %28 : vector<8x128xf32>
    %c0_10 = arith.constant 0 : index
    %c0_11 = arith.constant 0 : index
    %30 = vector.load %arg7[%c0_10, %c0_11] : memref<8x128xf32, #tpu.memory_space<vmem>>, vector<8x128xf32>
    %31 = arith.mulf %21, %30 : vector<8x128xf32>
    %32 = arith.mulf %15, %23 : vector<8x128xf32>
    %33 = arith.addf %31, %32 : vector<8x128xf32>
    %34 = math.tanh %33 : vector<8x128xf32>
    %35 = arith.mulf %29, %34 : vector<8x128xf32>
    %c0_12 = arith.constant 0 : index
    %c0_13 = arith.constant 0 : index
    %36 = vector.load %arg7[%c0_12, %c0_13] : memref<8x128xf32, #tpu.memory_space<vmem>>, vector<8x128xf32>
    tpu.vector_store %arg7[%c0_12, %c0_13], %33 {strides = array<i32>} : memref<8x128xf32, #tpu.memory_space<vmem>>, vector<8x128xf32>,
    %c0_14 = arith.constant 0 : index
    %c0_15 = arith.constant 0 : index
    %37 = vector.load %arg6[%c0_14, %c0_15] : memref<8x128xf32, #tpu.memory_space<vmem>>, vector<8x128xf32>
    tpu.vector_store %arg6[%c0_14, %c0_15], %35 {strides = array<i32>} : memref<8x128xf32, #tpu.memory_space<vmem>>, vector<8x128xf32>,
    %c1_i32 = arith.constant 1 : i32
    %38 = arith.index_cast %c1_i32 : i32 to index
    %c0_16 = arith.constant 0 : index
    %c0_17 = arith.constant 0 : index
    %39 = vector.load %arg1[%38, %c0_16, %c0_17] : memref<8x8x512xf32, #tpu.memory_space<vmem>>, vector<1x8x512xf32>
    %40 = vector.shape_cast %39 : vector<1x8x512xf32> to vector<8x512xf32>
    %c0_18 = arith.constant 0 : index
    %c0_19 = arith.constant 0 : index
    %41 = vector.load %arg6[%c0_18, %c0_19] : memref<8x128xf32, #tpu.memory_space<vmem>>, vector<8x128xf32>
    %c0_20 = arith.constant 0 : index
    %c0_21 = arith.constant 0 : index
    %42 = vector.load %arg2[%c0_20, %c0_21] : memref<128x512xf32, #tpu.memory_space<vmem>>, vector<128x512xf32>
    %cst_22 = arith.constant dense<0.000000e+00> : vector<8x512xf32>
    %43 = tpu.matmul %41, %42, %cst_22 {dimension_numbers = #tpu.dot_dimension_numbers<[1], [0], [0], [1], [0, 0, 1, 1], [], []>} : vector<8x128xf32>, vector<128x512xf32>, vector<8x512xf32> -> vector<8x512xf32>
    %44 = arith.addf %40, %43 : vector<8x512xf32>
    %45 = vector.extract_strided_slice %44 {offsets = [0, 0], sizes = [8, 128], strides = [1, 1]} : vector<8x512xf32> to vector<8x128xf32>
    %46 = arith.negf %45 : vector<8x128xf32>
    %47 = math.exp %46 : vector<8x128xf32>
    %cst_23 = arith.constant 1.000000e+00 : f32
    %48 = vector.broadcast %cst_23 : f32 to vector<8x128xf32>
    %49 = arith.addf %48, %47 : vector<8x128xf32>
    %50 = arith.divf %48, %49 : vector<8x128xf32>
    %51 = vector.extract_strided_slice %44 {offsets = [0, 128], sizes = [8, 128], strides = [1, 1]} : vector<8x512xf32> to vector<8x128xf32>
    %52 = arith.negf %51 : vector<8x128xf32>
    %53 = math.exp %52 : vector<8x128xf32>
    %cst_24 = arith.constant 1.000000e+00 : f32
    %54 = vector.broadcast %cst_24 : f32 to vector<8x128xf32>
    %55 = arith.addf %54, %53 : vector<8x128xf32>
    %56 = arith.divf %54, %55 : vector<8x128xf32>
    %57 = vector.extract_strided_slice %44 {offsets = [0, 256], sizes = [8, 128], strides = [1, 1]} : vector<8x512xf32> to vector<8x128xf32>
    %58 = math.tanh %57 : vector<8x128xf32>
    %59 = vector.extract_strided_slice %44 {offsets = [0, 384], sizes = [8, 128], strides = [1, 1]} : vector<8x512xf32> to vector<8x128xf32>
    %60 = arith.negf %59 : vector<8x128xf32>
    %61 = math.exp %60 : vector<8x128xf32>
    %cst_25 = arith.constant 1.000000e+00 : f32
    %62 = vector.broadcast %cst_25 : f32 to vector<8x128xf32>
    %63 = arith.addf %62, %61 : vector<8x128xf32>
    %64 = arith.divf %62, %63 : vector<8x128xf32>
    %c0_26 = arith.constant 0 : index
    %c0_27 = arith.constant 0 : index
    %65 = vector.load %arg7[%c0_26, %c0_27] : memref<8x128xf32, #tpu.memory_space<vmem>>, vector<8x128xf32>
    %66 = arith.mulf %56, %65 : vector<8x128xf32>
    %67 = arith.mulf %50, %58 : vector<8x128xf32>
    %68 = arith.addf %66, %67 : vector<8x128xf32>
    %69 = math.tanh %68 : vector<8x128xf32>
    %70 = arith.mulf %64, %69 : vector<8x128xf32>
    %c0_28 = arith.constant 0 : index
    %c0_29 = arith.constant 0 : index
    %71 = vector.load %arg7[%c0_28, %c0_29] : memref<8x128xf32, #tpu.memory_space<vmem>>, vector<8x128xf32>
    tpu.vector_store %arg7[%c0_28, %c0_29], %68 {strides = array<i32>} : memref<8x128xf32, #tpu.memory_space<vmem>>, vector<8x128xf32>,
    %c0_30 = arith.constant 0 : index
    %c0_31 = arith.constant 0 : index
    %72 = vector.load %arg6[%c0_30, %c0_31] : memref<8x128xf32, #tpu.memory_space<vmem>>, vector<8x128xf32>
    tpu.vector_store %arg6[%c0_30, %c0_31], %70 {strides = array<i32>} : memref<8x128xf32, #tpu.memory_space<vmem>>, vector<8x128xf32>,
    %c2_i32 = arith.constant 2 : i32
    %73 = arith.index_cast %c2_i32 : i32 to index
    %c0_32 = arith.constant 0 : index
    %c0_33 = arith.constant 0 : index
    %74 = vector.load %arg1[%73, %c0_32, %c0_33] : memref<8x8x512xf32, #tpu.memory_space<vmem>>, vector<1x8x512xf32>
    %75 = vector.shape_cast %74 : vector<1x8x512xf32> to vector<8x512xf32>
    %c0_34 = arith.constant 0 : index
    %c0_35 = arith.constant 0 : index
    %76 = vector.load %arg6[%c0_34, %c0_35] : memref<8x128xf32, #tpu.memory_space<vmem>>, vector<8x128xf32>
    %c0_36 = arith.constant 0 : index
    %c0_37 = arith.constant 0 : index
    %77 = vector.load %arg2[%c0_36, %c0_37] : memref<128x512xf32, #tpu.memory_space<vmem>>, vector<128x512xf32>
    %cst_38 = arith.constant dense<0.000000e+00> : vector<8x512xf32>
    %78 = tpu.matmul %76, %77, %cst_38 {dimension_numbers = #tpu.dot_dimension_numbers<[1], [0], [0], [1], [0, 0, 1, 1], [], []>} : vector<8x128xf32>, vector<128x512xf32>, vector<8x512xf32> -> vector<8x512xf32>
    %79 = arith.addf %75, %78 : vector<8x512xf32>
    %80 = vector.extract_strided_slice %79 {offsets = [0, 0], sizes = [8, 128], strides = [1, 1]} : vector<8x512xf32> to vector<8x128xf32>
    %81 = arith.negf %80 : vector<8x128xf32>
    %82 = math.exp %81 : vector<8x128xf32>
    %cst_39 = arith.constant 1.000000e+00 : f32
    %83 = vector.broadcast %cst_39 : f32 to vector<8x128xf32>
    %84 = arith.addf %83, %82 : vector<8x128xf32>
    %85 = arith.divf %83, %84 : vector<8x128xf32>
    %86 = vector.extract_strided_slice %79 {offsets = [0, 128], sizes = [8, 128], strides = [1, 1]} : vector<8x512xf32> to vector<8x128xf32>
    %87 = arith.negf %86 : vector<8x128xf32>
    %88 = math.exp %87 : vector<8x128xf32>
    %cst_40 = arith.constant 1.000000e+00 : f32
    %89 = vector.broadcast %cst_40 : f32 to vector<8x128xf32>
    %90 = arith.addf %89, %88 : vector<8x128xf32>
    %91 = arith.divf %89, %90 : vector<8x128xf32>
    %92 = vector.extract_strided_slice %79 {offsets = [0, 256], sizes = [8, 128], strides = [1, 1]} : vector<8x512xf32> to vector<8x128xf32>
    %93 = math.tanh %92 : vector<8x128xf32>
    %94 = vector.extract_strided_slice %79 {offsets = [0, 384], sizes = [8, 128], strides = [1, 1]} : vector<8x512xf32> to vector<8x128xf32>
    %95 = arith.negf %94 : vector<8x128xf32>
    %96 = math.exp %95 : vector<8x128xf32>
    %cst_41 = arith.constant 1.000000e+00 : f32
    %97 = vector.broadcast %cst_41 : f32 to vector<8x128xf32>
    %98 = arith.addf %97, %96 : vector<8x128xf32>
    %99 = arith.divf %97, %98 : vector<8x128xf32>
    %c0_42 = arith.constant 0 : index
    %c0_43 = arith.constant 0 : index
    %100 = vector.load %arg7[%c0_42, %c0_43] : memref<8x128xf32, #tpu.memory_space<vmem>>, vector<8x128xf32>
    %101 = arith.mulf %91, %100 : vector<8x128xf32>
    %102 = arith.mulf %85, %93 : vector<8x128xf32>
    %103 = arith.addf %101, %102 : vector<8x128xf32>
    %104 = math.tanh %103 : vector<8x128xf32>
    %105 = arith.mulf %99, %104 : vector<8x128xf32>
    %c0_44 = arith.constant 0 : index
    %c0_45 = arith.constant 0 : index
    %106 = vector.load %arg7[%c0_44, %c0_45] : memref<8x128xf32, #tpu.memory_space<vmem>>, vector<8x128xf32>
    tpu.vector_store %arg7[%c0_44, %c0_45], %103 {strides = array<i32>} : memref<8x128xf32, #tpu.memory_space<vmem>>, vector<8x128xf32>,
    %c0_46 = arith.constant 0 : index
    %c0_47 = arith.constant 0 : index
    %107 = vector.load %arg6[%c0_46, %c0_47] : memref<8x128xf32, #tpu.memory_space<vmem>>, vector<8x128xf32>
    tpu.vector_store %arg6[%c0_46, %c0_47], %105 {strides = array<i32>} : memref<8x128xf32, #tpu.memory_space<vmem>>, vector<8x128xf32>,
    %c3_i32 = arith.constant 3 : i32
    %108 = arith.index_cast %c3_i32 : i32 to index
    %c0_48 = arith.constant 0 : index
    %c0_49 = arith.constant 0 : index
    %109 = vector.load %arg1[%108, %c0_48, %c0_49] : memref<8x8x512xf32, #tpu.memory_space<vmem>>, vector<1x8x512xf32>
    %110 = vector.shape_cast %109 : vector<1x8x512xf32> to vector<8x512xf32>
    %c0_50 = arith.constant 0 : index
    %c0_51 = arith.constant 0 : index
    %111 = vector.load %arg6[%c0_50, %c0_51] : memref<8x128xf32, #tpu.memory_space<vmem>>, vector<8x128xf32>
    %c0_52 = arith.constant 0 : index
    %c0_53 = arith.constant 0 : index
    %112 = vector.load %arg2[%c0_52, %c0_53] : memref<128x512xf32, #tpu.memory_space<vmem>>, vector<128x512xf32>
    %cst_54 = arith.constant dense<0.000000e+00> : vector<8x512xf32>
    %113 = tpu.matmul %111, %112, %cst_54 {dimension_numbers = #tpu.dot_dimension_numbers<[1], [0], [0], [1], [0, 0, 1, 1], [], []>} : vector<8x128xf32>, vector<128x512xf32>, vector<8x512xf32> -> vector<8x512xf32>
    %114 = arith.addf %110, %113 : vector<8x512xf32>
    %115 = vector.extract_strided_slice %114 {offsets = [0, 0], sizes = [8, 128], strides = [1, 1]} : vector<8x512xf32> to vector<8x128xf32>
    %116 = arith.negf %115 : vector<8x128xf32>
    %117 = math.exp %116 : vector<8x128xf32>
    %cst_55 = arith.constant 1.000000e+00 : f32
    %118 = vector.broadcast %cst_55 : f32 to vector<8x128xf32>
    %119 = arith.addf %118, %117 : vector<8x128xf32>
    %120 = arith.divf %118, %119 : vector<8x128xf32>
    %121 = vector.extract_strided_slice %114 {offsets = [0, 128], sizes = [8, 128], strides = [1, 1]} : vector<8x512xf32> to vector<8x128xf32>
    %122 = arith.negf %121 : vector<8x128xf32>
    %123 = math.exp %122 : vector<8x128xf32>
    %cst_56 = arith.constant 1.000000e+00 : f32
    %124 = vector.broadcast %cst_56 : f32 to vector<8x128xf32>
    %125 = arith.addf %124, %123 : vector<8x128xf32>
    %126 = arith.divf %124, %125 : vector<8x128xf32>
    %127 = vector.extract_strided_slice %114 {offsets = [0, 256], sizes = [8, 128], strides = [1, 1]} : vector<8x512xf32> to vector<8x128xf32>
    %128 = math.tanh %127 : vector<8x128xf32>
    %129 = vector.extract_strided_slice %114 {offsets = [0, 384], sizes = [8, 128], strides = [1, 1]} : vector<8x512xf32> to vector<8x128xf32>
    %130 = arith.negf %129 : vector<8x128xf32>
    %131 = math.exp %130 : vector<8x128xf32>
    %cst_57 = arith.constant 1.000000e+00 : f32
    %132 = vector.broadcast %cst_57 : f32 to vector<8x128xf32>
    %133 = arith.addf %132, %131 : vector<8x128xf32>
    %134 = arith.divf %132, %133 : vector<8x128xf32>
    %c0_58 = arith.constant 0 : index
    %c0_59 = arith.constant 0 : index
    %135 = vector.load %arg7[%c0_58, %c0_59] : memref<8x128xf32, #tpu.memory_space<vmem>>, vector<8x128xf32>
    %136 = arith.mulf %126, %135 : vector<8x128xf32>
    %137 = arith.mulf %120, %128 : vector<8x128xf32>
    %138 = arith.addf %136, %137 : vector<8x128xf32>
    %139 = math.tanh %138 : vector<8x128xf32>
    %140 = arith.mulf %134, %139 : vector<8x128xf32>
    %c0_60 = arith.constant 0 : index
    %c0_61 = arith.constant 0 : index
    %141 = vector.load %arg7[%c0_60, %c0_61] : memref<8x128xf32, #tpu.memory_space<vmem>>, vector<8x128xf32>
    tpu.vector_store %arg7[%c0_60, %c0_61], %138 {strides = array<i32>} : memref<8x128xf32, #tpu.memory_space<vmem>>, vector<8x128xf32>,
    %c0_62 = arith.constant 0 : index
    %c0_63 = arith.constant 0 : index
    %142 = vector.load %arg6[%c0_62, %c0_63] : memref<8x128xf32, #tpu.memory_space<vmem>>, vector<8x128xf32>
    tpu.vector_store %arg6[%c0_62, %c0_63], %140 {strides = array<i32>} : memref<8x128xf32, #tpu.memory_space<vmem>>, vector<8x128xf32>,
    %c4_i32 = arith.constant 4 : i32
    %143 = arith.index_cast %c4_i32 : i32 to index
    %c0_64 = arith.constant 0 : index
    %c0_65 = arith.constant 0 : index
    %144 = vector.load %arg1[%143, %c0_64, %c0_65] : memref<8x8x512xf32, #tpu.memory_space<vmem>>, vector<1x8x512xf32>
    %145 = vector.shape_cast %144 : vector<1x8x512xf32> to vector<8x512xf32>
    %c0_66 = arith.constant 0 : index
    %c0_67 = arith.constant 0 : index
    %146 = vector.load %arg6[%c0_66, %c0_67] : memref<8x128xf32, #tpu.memory_space<vmem>>, vector<8x128xf32>
    %c0_68 = arith.constant 0 : index
    %c0_69 = arith.constant 0 : index
    %147 = vector.load %arg2[%c0_68, %c0_69] : memref<128x512xf32, #tpu.memory_space<vmem>>, vector<128x512xf32>
    %cst_70 = arith.constant dense<0.000000e+00> : vector<8x512xf32>
    %148 = tpu.matmul %146, %147, %cst_70 {dimension_numbers = #tpu.dot_dimension_numbers<[1], [0], [0], [1], [0, 0, 1, 1], [], []>} : vector<8x128xf32>, vector<128x512xf32>, vector<8x512xf32> -> vector<8x512xf32>
    %149 = arith.addf %145, %148 : vector<8x512xf32>
    %150 = vector.extract_strided_slice %149 {offsets = [0, 0], sizes = [8, 128], strides = [1, 1]} : vector<8x512xf32> to vector<8x128xf32>
    %151 = arith.negf %150 : vector<8x128xf32>
    %152 = math.exp %151 : vector<8x128xf32>
    %cst_71 = arith.constant 1.000000e+00 : f32
    %153 = vector.broadcast %cst_71 : f32 to vector<8x128xf32>
    %154 = arith.addf %153, %152 : vector<8x128xf32>
    %155 = arith.divf %153, %154 : vector<8x128xf32>
    %156 = vector.extract_strided_slice %149 {offsets = [0, 128], sizes = [8, 128], strides = [1, 1]} : vector<8x512xf32> to vector<8x128xf32>
    %157 = arith.negf %156 : vector<8x128xf32>
    %158 = math.exp %157 : vector<8x128xf32>
    %cst_72 = arith.constant 1.000000e+00 : f32
    %159 = vector.broadcast %cst_72 : f32 to vector<8x128xf32>
    %160 = arith.addf %159, %158 : vector<8x128xf32>
    %161 = arith.divf %159, %160 : vector<8x128xf32>
    %162 = vector.extract_strided_slice %149 {offsets = [0, 256], sizes = [8, 128], strides = [1, 1]} : vector<8x512xf32> to vector<8x128xf32>
    %163 = math.tanh %162 : vector<8x128xf32>
    %164 = vector.extract_strided_slice %149 {offsets = [0, 384], sizes = [8, 128], strides = [1, 1]} : vector<8x512xf32> to vector<8x128xf32>
    %165 = arith.negf %164 : vector<8x128xf32>
    %166 = math.exp %165 : vector<8x128xf32>
    %cst_73 = arith.constant 1.000000e+00 : f32
    %167 = vector.broadcast %cst_73 : f32 to vector<8x128xf32>
    %168 = arith.addf %167, %166 : vector<8x128xf32>
    %169 = arith.divf %167, %168 : vector<8x128xf32>
    %c0_74 = arith.constant 0 : index
    %c0_75 = arith.constant 0 : index
    %170 = vector.load %arg7[%c0_74, %c0_75] : memref<8x128xf32, #tpu.memory_space<vmem>>, vector<8x128xf32>
    %171 = arith.mulf %161, %170 : vector<8x128xf32>
    %172 = arith.mulf %155, %163 : vector<8x128xf32>
    %173 = arith.addf %171, %172 : vector<8x128xf32>
    %174 = math.tanh %173 : vector<8x128xf32>
    %175 = arith.mulf %169, %174 : vector<8x128xf32>
    %c0_76 = arith.constant 0 : index
    %c0_77 = arith.constant 0 : index
    %176 = vector.load %arg7[%c0_76, %c0_77] : memref<8x128xf32, #tpu.memory_space<vmem>>, vector<8x128xf32>
    tpu.vector_store %arg7[%c0_76, %c0_77], %173 {strides = array<i32>} : memref<8x128xf32, #tpu.memory_space<vmem>>, vector<8x128xf32>,
    %c0_78 = arith.constant 0 : index
    %c0_79 = arith.constant 0 : index
    %177 = vector.load %arg6[%c0_78, %c0_79] : memref<8x128xf32, #tpu.memory_space<vmem>>, vector<8x128xf32>
    tpu.vector_store %arg6[%c0_78, %c0_79], %175 {strides = array<i32>} : memref<8x128xf32, #tpu.memory_space<vmem>>, vector<8x128xf32>,
    %c5_i32 = arith.constant 5 : i32
    %178 = arith.index_cast %c5_i32 : i32 to index
    %c0_80 = arith.constant 0 : index
    %c0_81 = arith.constant 0 : index
    %179 = vector.load %arg1[%178, %c0_80, %c0_81] : memref<8x8x512xf32, #tpu.memory_space<vmem>>, vector<1x8x512xf32>
    %180 = vector.shape_cast %179 : vector<1x8x512xf32> to vector<8x512xf32>
    %c0_82 = arith.constant 0 : index
    %c0_83 = arith.constant 0 : index
    %181 = vector.load %arg6[%c0_82, %c0_83] : memref<8x128xf32, #tpu.memory_space<vmem>>, vector<8x128xf32>
    %c0_84 = arith.constant 0 : index
    %c0_85 = arith.constant 0 : index
    %182 = vector.load %arg2[%c0_84, %c0_85] : memref<128x512xf32, #tpu.memory_space<vmem>>, vector<128x512xf32>
    %cst_86 = arith.constant dense<0.000000e+00> : vector<8x512xf32>
    %183 = tpu.matmul %181, %182, %cst_86 {dimension_numbers = #tpu.dot_dimension_numbers<[1], [0], [0], [1], [0, 0, 1, 1], [], []>} : vector<8x128xf32>, vector<128x512xf32>, vector<8x512xf32> -> vector<8x512xf32>
    %184 = arith.addf %180, %183 : vector<8x512xf32>
    %185 = vector.extract_strided_slice %184 {offsets = [0, 0], sizes = [8, 128], strides = [1, 1]} : vector<8x512xf32> to vector<8x128xf32>
    %186 = arith.negf %185 : vector<8x128xf32>
    %187 = math.exp %186 : vector<8x128xf32>
    %cst_87 = arith.constant 1.000000e+00 : f32
    %188 = vector.broadcast %cst_87 : f32 to vector<8x128xf32>
    %189 = arith.addf %188, %187 : vector<8x128xf32>
    %190 = arith.divf %188, %189 : vector<8x128xf32>
    %191 = vector.extract_strided_slice %184 {offsets = [0, 128], sizes = [8, 128], strides = [1, 1]} : vector<8x512xf32> to vector<8x128xf32>
    %192 = arith.negf %191 : vector<8x128xf32>
    %193 = math.exp %192 : vector<8x128xf32>
    %cst_88 = arith.constant 1.000000e+00 : f32
    %194 = vector.broadcast %cst_88 : f32 to vector<8x128xf32>
    %195 = arith.addf %194, %193 : vector<8x128xf32>
    %196 = arith.divf %194, %195 : vector<8x128xf32>
    %197 = vector.extract_strided_slice %184 {offsets = [0, 256], sizes = [8, 128], strides = [1, 1]} : vector<8x512xf32> to vector<8x128xf32>
    %198 = math.tanh %197 : vector<8x128xf32>
    %199 = vector.extract_strided_slice %184 {offsets = [0, 384], sizes = [8, 128], strides = [1, 1]} : vector<8x512xf32> to vector<8x128xf32>
    %200 = arith.negf %199 : vector<8x128xf32>
    %201 = math.exp %200 : vector<8x128xf32>
    %cst_89 = arith.constant 1.000000e+00 : f32
    %202 = vector.broadcast %cst_89 : f32 to vector<8x128xf32>
    %203 = arith.addf %202, %201 : vector<8x128xf32>
    %204 = arith.divf %202, %203 : vector<8x128xf32>
    %c0_90 = arith.constant 0 : index
    %c0_91 = arith.constant 0 : index
    %205 = vector.load %arg7[%c0_90, %c0_91] : memref<8x128xf32, #tpu.memory_space<vmem>>, vector<8x128xf32>
    %206 = arith.mulf %196, %205 : vector<8x128xf32>
    %207 = arith.mulf %190, %198 : vector<8x128xf32>
    %208 = arith.addf %206, %207 : vector<8x128xf32>
    %209 = math.tanh %208 : vector<8x128xf32>
    %210 = arith.mulf %204, %209 : vector<8x128xf32>
    %c0_92 = arith.constant 0 : index
    %c0_93 = arith.constant 0 : index
    %211 = vector.load %arg7[%c0_92, %c0_93] : memref<8x128xf32, #tpu.memory_space<vmem>>, vector<8x128xf32>
    tpu.vector_store %arg7[%c0_92, %c0_93], %208 {strides = array<i32>} : memref<8x128xf32, #tpu.memory_space<vmem>>, vector<8x128xf32>,
    %c0_94 = arith.constant 0 : index
    %c0_95 = arith.constant 0 : index
    %212 = vector.load %arg6[%c0_94, %c0_95] : memref<8x128xf32, #tpu.memory_space<vmem>>, vector<8x128xf32>
    tpu.vector_store %arg6[%c0_94, %c0_95], %210 {strides = array<i32>} : memref<8x128xf32, #tpu.memory_space<vmem>>, vector<8x128xf32>,
    %c6_i32 = arith.constant 6 : i32
    %213 = arith.index_cast %c6_i32 : i32 to index
    %c0_96 = arith.constant 0 : index
    %c0_97 = arith.constant 0 : index
    %214 = vector.load %arg1[%213, %c0_96, %c0_97] : memref<8x8x512xf32, #tpu.memory_space<vmem>>, vector<1x8x512xf32>
    %215 = vector.shape_cast %214 : vector<1x8x512xf32> to vector<8x512xf32>
    %c0_98 = arith.constant 0 : index
    %c0_99 = arith.constant 0 : index
    %216 = vector.load %arg6[%c0_98, %c0_99] : memref<8x128xf32, #tpu.memory_space<vmem>>, vector<8x128xf32>
    %c0_100 = arith.constant 0 : index
    %c0_101 = arith.constant 0 : index
    %217 = vector.load %arg2[%c0_100, %c0_101] : memref<128x512xf32, #tpu.memory_space<vmem>>, vector<128x512xf32>
    %cst_102 = arith.constant dense<0.000000e+00> : vector<8x512xf32>
    %218 = tpu.matmul %216, %217, %cst_102 {dimension_numbers = #tpu.dot_dimension_numbers<[1], [0], [0], [1], [0, 0, 1, 1], [], []>} : vector<8x128xf32>, vector<128x512xf32>, vector<8x512xf32> -> vector<8x512xf32>
    %219 = arith.addf %215, %218 : vector<8x512xf32>
    %220 = vector.extract_strided_slice %219 {offsets = [0, 0], sizes = [8, 128], strides = [1, 1]} : vector<8x512xf32> to vector<8x128xf32>
    %221 = arith.negf %220 : vector<8x128xf32>
    %222 = math.exp %221 : vector<8x128xf32>
    %cst_103 = arith.constant 1.000000e+00 : f32
    %223 = vector.broadcast %cst_103 : f32 to vector<8x128xf32>
    %224 = arith.addf %223, %222 : vector<8x128xf32>
    %225 = arith.divf %223, %224 : vector<8x128xf32>
    %226 = vector.extract_strided_slice %219 {offsets = [0, 128], sizes = [8, 128], strides = [1, 1]} : vector<8x512xf32> to vector<8x128xf32>
    %227 = arith.negf %226 : vector<8x128xf32>
    %228 = math.exp %227 : vector<8x128xf32>
    %cst_104 = arith.constant 1.000000e+00 : f32
    %229 = vector.broadcast %cst_104 : f32 to vector<8x128xf32>
    %230 = arith.addf %229, %228 : vector<8x128xf32>
    %231 = arith.divf %229, %230 : vector<8x128xf32>
    %232 = vector.extract_strided_slice %219 {offsets = [0, 256], sizes = [8, 128], strides = [1, 1]} : vector<8x512xf32> to vector<8x128xf32>
    %233 = math.tanh %232 : vector<8x128xf32>
    %234 = vector.extract_strided_slice %219 {offsets = [0, 384], sizes = [8, 128], strides = [1, 1]} : vector<8x512xf32> to vector<8x128xf32>
    %235 = arith.negf %234 : vector<8x128xf32>
    %236 = math.exp %235 : vector<8x128xf32>
    %cst_105 = arith.constant 1.000000e+00 : f32
    %237 = vector.broadcast %cst_105 : f32 to vector<8x128xf32>
    %238 = arith.addf %237, %236 : vector<8x128xf32>
    %239 = arith.divf %237, %238 : vector<8x128xf32>
    %c0_106 = arith.constant 0 : index
    %c0_107 = arith.constant 0 : index
    %240 = vector.load %arg7[%c0_106, %c0_107] : memref<8x128xf32, #tpu.memory_space<vmem>>, vector<8x128xf32>
    %241 = arith.mulf %231, %240 : vector<8x128xf32>
    %242 = arith.mulf %225, %233 : vector<8x128xf32>
    %243 = arith.addf %241, %242 : vector<8x128xf32>
    %244 = math.tanh %243 : vector<8x128xf32>
    %245 = arith.mulf %239, %244 : vector<8x128xf32>
    %c0_108 = arith.constant 0 : index
    %c0_109 = arith.constant 0 : index
    %246 = vector.load %arg7[%c0_108, %c0_109] : memref<8x128xf32, #tpu.memory_space<vmem>>, vector<8x128xf32>
    tpu.vector_store %arg7[%c0_108, %c0_109], %243 {strides = array<i32>} : memref<8x128xf32, #tpu.memory_space<vmem>>, vector<8x128xf32>,
    %c0_110 = arith.constant 0 : index
    %c0_111 = arith.constant 0 : index
    %247 = vector.load %arg6[%c0_110, %c0_111] : memref<8x128xf32, #tpu.memory_space<vmem>>, vector<8x128xf32>
    tpu.vector_store %arg6[%c0_110, %c0_111], %245 {strides = array<i32>} : memref<8x128xf32, #tpu.memory_space<vmem>>, vector<8x128xf32>,
    %c7_i32 = arith.constant 7 : i32
    %248 = arith.index_cast %c7_i32 : i32 to index
    %c0_112 = arith.constant 0 : index
    %c0_113 = arith.constant 0 : index
    %249 = vector.load %arg1[%248, %c0_112, %c0_113] : memref<8x8x512xf32, #tpu.memory_space<vmem>>, vector<1x8x512xf32>
    %250 = vector.shape_cast %249 : vector<1x8x512xf32> to vector<8x512xf32>
    %c0_114 = arith.constant 0 : index
    %c0_115 = arith.constant 0 : index
    %251 = vector.load %arg6[%c0_114, %c0_115] : memref<8x128xf32, #tpu.memory_space<vmem>>, vector<8x128xf32>
    %c0_116 = arith.constant 0 : index
    %c0_117 = arith.constant 0 : index
    %252 = vector.load %arg2[%c0_116, %c0_117] : memref<128x512xf32, #tpu.memory_space<vmem>>, vector<128x512xf32>
    %cst_118 = arith.constant dense<0.000000e+00> : vector<8x512xf32>
    %253 = tpu.matmul %251, %252, %cst_118 {dimension_numbers = #tpu.dot_dimension_numbers<[1], [0], [0], [1], [0, 0, 1, 1], [], []>} : vector<8x128xf32>, vector<128x512xf32>, vector<8x512xf32> -> vector<8x512xf32>
    %254 = arith.addf %250, %253 : vector<8x512xf32>
    %255 = vector.extract_strided_slice %254 {offsets = [0, 0], sizes = [8, 128], strides = [1, 1]} : vector<8x512xf32> to vector<8x128xf32>
    %256 = arith.negf %255 : vector<8x128xf32>
    %257 = math.exp %256 : vector<8x128xf32>
    %cst_119 = arith.constant 1.000000e+00 : f32
    %258 = vector.broadcast %cst_119 : f32 to vector<8x128xf32>
    %259 = arith.addf %258, %257 : vector<8x128xf32>
    %260 = arith.divf %258, %259 : vector<8x128xf32>
    %261 = vector.extract_strided_slice %254 {offsets = [0, 128], sizes = [8, 128], strides = [1, 1]} : vector<8x512xf32> to vector<8x128xf32>
    %262 = arith.negf %261 : vector<8x128xf32>
    %263 = math.exp %262 : vector<8x128xf32>
    %cst_120 = arith.constant 1.000000e+00 : f32
    %264 = vector.broadcast %cst_120 : f32 to vector<8x128xf32>
    %265 = arith.addf %264, %263 : vector<8x128xf32>
    %266 = arith.divf %264, %265 : vector<8x128xf32>
    %267 = vector.extract_strided_slice %254 {offsets = [0, 256], sizes = [8, 128], strides = [1, 1]} : vector<8x512xf32> to vector<8x128xf32>
    %268 = math.tanh %267 : vector<8x128xf32>
    %269 = vector.extract_strided_slice %254 {offsets = [0, 384], sizes = [8, 128], strides = [1, 1]} : vector<8x512xf32> to vector<8x128xf32>
    %270 = arith.negf %269 : vector<8x128xf32>
    %271 = math.exp %270 : vector<8x128xf32>
    %cst_121 = arith.constant 1.000000e+00 : f32
    %272 = vector.broadcast %cst_121 : f32 to vector<8x128xf32>
    %273 = arith.addf %272, %271 : vector<8x128xf32>
    %274 = arith.divf %272, %273 : vector<8x128xf32>
    %c0_122 = arith.constant 0 : index
    %c0_123 = arith.constant 0 : index
    %275 = vector.load %arg7[%c0_122, %c0_123] : memref<8x128xf32, #tpu.memory_space<vmem>>, vector<8x128xf32>
    %276 = arith.mulf %266, %275 : vector<8x128xf32>
    %277 = arith.mulf %260, %268 : vector<8x128xf32>
    %278 = arith.addf %276, %277 : vector<8x128xf32>
    %279 = math.tanh %278 : vector<8x128xf32>
    %280 = arith.mulf %274, %279 : vector<8x128xf32>
    %c0_124 = arith.constant 0 : index
    %c0_125 = arith.constant 0 : index
    %281 = vector.load %arg7[%c0_124, %c0_125] : memref<8x128xf32, #tpu.memory_space<vmem>>, vector<8x128xf32>
    tpu.vector_store %arg7[%c0_124, %c0_125], %278 {strides = array<i32>} : memref<8x128xf32, #tpu.memory_space<vmem>>, vector<8x128xf32>,
    %c0_126 = arith.constant 0 : index
    %c0_127 = arith.constant 0 : index
    %282 = vector.load %arg6[%c0_126, %c0_127] : memref<8x128xf32, #tpu.memory_space<vmem>>, vector<8x128xf32>
    tpu.vector_store %arg6[%c0_126, %c0_127], %280 {strides = array<i32>} : memref<8x128xf32, #tpu.memory_space<vmem>>, vector<8x128xf32>,
    %c8_i32 = arith.constant 8 : i32
    %c0_i32_128 = arith.constant 0 : i32
    %283 = arith.cmpi eq, %arg0, %c0_i32_128 : i32
    %284 = arith.extui %283 : i1 to i32
    %c0_i32_129 = arith.constant 0 : i32
    %285 = arith.cmpi ne, %284, %c0_i32_129 : i32
    scf.if %285 {
      %c0_130 = arith.constant 0 : index
      %c0_131 = arith.constant 0 : index
      %286 = vector.load %arg6[%c0_130, %c0_131] : memref<8x128xf32, #tpu.memory_space<vmem>>, vector<8x128xf32>
      %c0_132 = arith.constant 0 : index
      %c0_133 = arith.constant 0 : index
      %287 = vector.load %arg3[%c0_132, %c0_133] : memref<128x128xf32, #tpu.memory_space<vmem>>, vector<128x128xf32>
      %cst_134 = arith.constant dense<0.000000e+00> : vector<8x128xf32>
      %288 = tpu.matmul %286, %287, %cst_134 {dimension_numbers = #tpu.dot_dimension_numbers<[1], [0], [0], [1], [0, 0, 1, 1], [], []>} : vector<8x128xf32>, vector<128x128xf32>, vector<8x128xf32> -> vector<8x128xf32>
      %c0_135 = arith.constant 0 : index
      %c0_136 = arith.constant 0 : index
      %289 = vector.load %arg4[%c0_135, %c0_136] : memref<1x128xf32, #tpu.memory_space<vmem>>, vector<1x128xf32>
      %290 = vector.broadcast %289 : vector<1x128xf32> to vector<8x128xf32>
      %291 = arith.addf %288, %290 : vector<8x128xf32>
      %c0_137 = arith.constant 0 : index
      %c0_138 = arith.constant 0 : index
      %292 = vector.load %arg5[%c0_137, %c0_138] : memref<8x128xf32, #tpu.memory_space<vmem>>, vector<8x128xf32>
      tpu.vector_store %arg5[%c0_137, %c0_138], %291 {strides = array<i32>} : memref<8x128xf32, #tpu.memory_space<vmem>>, vector<8x128xf32>,
    } else {
    }
    return
  }
  func.func @transform_0(%arg0: i32) -> (i32, i32, i32) {
    %c0_i32 = arith.constant 0 : i32
    %c0_i32_0 = arith.constant 0 : i32
    %c0_i32_1 = arith.constant 0 : i32
    return %arg0, %c0_i32, %c0_i32_0 : i32, i32, i32
  }
  func.func @transform_1(%arg0: i32) -> (i32, i32) {
    %c0_i32 = arith.constant 0 : i32
    %c0_i32_0 = arith.constant 0 : i32
    %c0_i32_1 = arith.constant 0 : i32
    return %c0_i32, %c0_i32_0 : i32, i32
  }
  func.func @transform_2(%arg0: i32) -> (i32, i32) {
    %c0_i32 = arith.constant 0 : i32
    %c0_i32_0 = arith.constant 0 : i32
    %c0_i32_1 = arith.constant 0 : i32
    return %c0_i32, %c0_i32_0 : i32, i32
  }
  func.func @transform_3(%arg0: i32) -> (i32, i32) {
    %c0_i32 = arith.constant 0 : i32
    %c0_i32_0 = arith.constant 0 : i32
    %c0_i32_1 = arith.constant 0 : i32
    return %c0_i32, %c0_i32_0 : i32, i32
  }
  func.func @transform_4(%arg0: i32) -> (i32, i32) {
    %c0_i32 = arith.constant 0 : i32
    %c0_i32_0 = arith.constant 0 : i32
    %c0_i32_1 = arith.constant 0 : i32
    return %c0_i32, %c0_i32_0 : i32, i32
  }
}

</mosaic_0001>

<bundles_post_ra>
// kernel: tpu_custom_call.1
= control target key start
LH: loop header
LB: loop body
LE: loop exit
PB: predicated region body
PF: predicated region fallthrough
CT: control target
= control target key end

     0   :  { %9 = vsyncpa [#allocation5], 0  ;;  %s3286_s0 = inlined_call_operand.hbm [shape: f32[8,8,512], index: 0, kind: input, shape index: {}]   ;;  %s3287_s1 = inlined_call_operand.hbm [shape: f32[128,512], index: 1, kind: input, shape index: {}]   ;;  %s3288_s2 = inlined_call_operand.hbm [shape: f32[128,128], index: 2, kind: input, shape index: {}]   ;;  %s3289_s3 = inlined_call_operand.vmem [shape: f32[1,128], index: 3, kind: input, shape index: {}]   ;;  %s3290_s4 = inlined_call_operand.hbm [shape: f32[8,128], index: 4, kind: output, shape index: {}]  }
   0x1   :  { %10 = vsyncpa [#allocation8], 0 }
   0x2   :  { %11 = vsyncpa [#allocation6], 0  ;;  %s2423_s15 = smov [#allocation7]   ;;  %s2424_s17 = smov [#allocation4]  }
   0x3   :  { %s29_s16 = sshll.u32 %s2423_s15, 4  ;;  %s17_s18 = sshll.u32 %s2424_s17, 4  ;;  %s30_s16 = int_to_ptr.vmem [resolvable:$true] %s29_s16  ;;  %s18_s18 = int_to_ptr.vmem [resolvable:$true] %s17_s18 }
   0x4   :  { %s2345_s19 = scalar_lea.vmem %s30_s16, 8192  ;;  %p2350_p1 = scmp.lt.s32.totalorder %s30_s16, %s30_s16 }
   0x5   :  { %p2346_p0 = scmp.ne.s32.totalorder %s30_s16, %s2345_s19  ;;  %p2351_p2 = scmp.lt.s32.totalorder %s2345_s19, %s2345_s19 }
   0x7   :  { %p2352_p3 = por %p2351_p2, %p2350_p1 }
   0x9   :  { %p2353_p4 = pnand %p2352_p3, %p2346_p0 }
   0xb   :  { %2356 = shalt.err (!%p2353_p4)
}
   0xc   :  { %s2425_s20 = smov 512   ;;  %s2426_s21 = smov 32  }
   0xd   :  { %35 = dma.hbm_to_vmem [thread:$0]  %s3287_s1, 8192, %s30_s16, [#allocation8], %s2425_s20, %s2425_s20, %s2426_s21  }
   0xe   :  { %s2365_s24 = scalar_lea.vmem %s18_s18, 4096  ;;  %p2370_p6 = scmp.lt.s32.totalorder %s18_s18, %s18_s18 }
   0xf   :  { %p2366_p5 = scmp.ne.s32.totalorder %s18_s18, %s2365_s24  ;;  %p2371_p7 = scmp.lt.s32.totalorder %s2365_s24, %s2365_s24 }
  0x11   :  { %p2372_p8 = por %p2371_p7, %p2370_p6 }
  0x13   :  { %p2373_p9 = pnand %p2372_p8, %p2366_p5 }
  0x15   :  { %2376 = shalt.err (!%p2373_p9)
}
  0x16   :  { %23 = dma.hbm_to_vmem [thread:$0]  %s3286_s0, 4096, %s18_s18, [#allocation5], %s2425_s20, %s2425_s20, %s2426_s21  }
  0x17   :  { %s2427_s27 = smov [#allocation9]  }
  0x18   :  { %s41_s28 = sshll.u32 %s2427_s27, 4  ;;  %s42_s28 = int_to_ptr.vmem [resolvable:$true] %s41_s28 }
  0x19   :  { %s2385_s29 = scalar_lea.vmem %s42_s28, 2048  ;;  %p2390_p11 = scmp.lt.s32.totalorder %s42_s28, %s42_s28 }
  0x1a   :  { %p2386_p10 = scmp.ne.s32.totalorder %s42_s28, %s2385_s29  ;;  %p2391_p12 = scmp.lt.s32.totalorder %s2385_s29, %s2385_s29 }
  0x1c   :  { %p2392_p13 = por %p2391_p12, %p2390_p11 }
  0x1e   :  { %p2393_p0 = pnand %p2392_p13, %p2386_p10 }
  0x20   :  { %2396 = shalt.err (!%p2393_p0)
}
  0x21   :  { %s2428_s1 = smov 128   ;;  %s2429_s30 = smov 8  }
  0x22   :  { %47 = dma.hbm_to_vmem [thread:$0]  %s3288_s2, 2048, %s42_s28, [#allocation8], %s2428_s1, %s2428_s1, %s2429_s30  }
  0x23   :  { %2417 = dma.done.wait [#allocation5], 4096  }
  0x24   :  { %2418 = vsyncadd [#allocation5], 4294963200 }
  0x25   :  { %2419 = dma.done.wait [#allocation8], 10240  }
  0x26   :  { %2420 = vsyncadd [#allocation8], 4294957056  ;;  %v3293_v0 = vmov 0.0   ;;  %v2469_v1 = vld [vmem:[#allocation7 + $0x1e8] sm:$0xff]  ;;  %v2471_v2 = vld [vmem:[#allocation7 + $0x1e0] sm:$0xff]  ;;  %vm2431_vm0 = vmmov 0  }
  0x27   :  { %198 = vmatprep.mubr.f32.mxu0 %v3293_v0  ;;  %269 = vmatprep.mubr.f32.mxu1 %v3293_v0  ;;  %3365 = vst [vmem:[#allocation14_spill] sm:$0xff] %v2469_v1  ;;  %v2473_v3 = vld [vmem:[#allocation7 + $0x1c8] sm:$0xff]  ;;  %v2476_v4 = vld [vmem:[#allocation7 + $0x1c0] sm:$0xff]  ;;  %v2490_v9 = vld [vmem:[#allocation7 + $0x1f8] sm:$0xff]  ;;  %s2432_s7 = smov [#allocation10]  }
  0x28   :  { %134 = vmatprep.subr.mxu0 %v2469_v1  ;;  %v2479_v5 = vld [vmem:[#allocation7 + $0x1a8] sm:$0xff]  ;;  %v2482_v6 = vld [vmem:[#allocation7 + $0x1a0] sm:$0xff]  ;;  %3366 = vst [vmem:[#allocation15_spill] sm:$0xff] %v2490_v9  ;;  %205 = vmatprep.subr.mxu1 %v2490_v9  ;;  %v2496_v11 = vld [vmem:[#allocation7 + $0x1f0] sm:$0xff]  ;;  %s2112_s8 = sshll.u32 %s2432_s7, 4  ;;  %s2113_s8 = int_to_ptr.vmem [resolvable:$true] %s2112_s8 }
  0x29   :  { %135 = vmatpush1.msra.mxu0 %v2471_v2  ;;  %v2485_v7 = vld [vmem:[#allocation7 + $0x188] sm:$0xff]  ;;  %v2488_v8 = vld [vmem:[#allocation7 + $0x180] sm:$0xff]  ;;  %206 = vmatpush1.msra.mxu1 %v2496_v11  ;;  %v2502_v13 = vld [vmem:[#allocation7 + $0x1d8] sm:$0xff]  ;;  %s2397_s9 = scalar_lea.vmem %s2113_s8, 128  ;;  %p2402_p2 = scmp.lt.s32.totalorder %s2113_s8, %s2113_s8 }
  0x2a   :  { %136 = vmatprep.subr.mxu0 %v2473_v3  ;;  %v2493_v10 = vld [vmem:[#allocation7 + $0x168] sm:$0xff]  ;;  %v2499_v12 = vld [vmem:[#allocation7 + $0x160] sm:$0xff]  ;;  %v2504_v14 = vld [vmem:[#allocation7 + $0x1d0] sm:$0xff]  ;;  %207 = vmatprep.subr.mxu1 %v2502_v13  ;;  %p2398_p1 = scmp.ne.s32.totalorder %s2113_s8, %s2397_s9  ;;  %p2403_p3 = scmp.lt.s32.totalorder %s2397_s9, %s2397_s9 }
  0x2b   :  { %137 = vmatpush1.msra.mxu0 %v2476_v4  ;;  %v2507_v15 = vld [vmem:[#allocation7 + $0x148] sm:$0xff]  ;;  %v2510_v16 = vld [vmem:[#allocation7 + $0x1b8] sm:$0xff]  ;;  %v2513_v17 = vld [vmem:[#allocation7 + $0x140] sm:$0xff]  ;;  %208 = vmatpush1.msra.mxu1 %v2504_v14 }
  0x2c   :  { %138 = vmatprep.subr.mxu0 %v2479_v5  ;;  %v2516_v18 = vld [vmem:[#allocation7 + $0x1b0] sm:$0xff]  ;;  %v2518_v19 = vld [vmem:[#allocation7 + $0x198] sm:$0xff]  ;;  %v2521_v20 = vld [vmem:[#allocation7 + $0x128] sm:$0xff]  ;;  %209 = vmatprep.subr.mxu1 %v2510_v16  ;;  %p2404_p4 = por %p2403_p3, %p2402_p2 }
  0x2d   :  { %139 = vmatpush1.msra.mxu0 %v2482_v6  ;;  %v2524_v21 = vld [vmem:[#allocation7 + $0x190] sm:$0xff]  ;;  %v2527_v22 = vld [vmem:[#allocation7 + $0x120] sm:$0xff]  ;;  %210 = vmatpush1.msra.mxu1 %v2516_v18  ;;  %v2530_v23 = vld [vmem:[#allocation7 + $0x178] sm:$0xff] }
  0x2e   :  { %140 = vmatprep.subr.mxu0 %v2485_v7  ;;  %v2533_v24 = vld [vmem:[#allocation7 + $0x108] sm:$0xff]  ;;  %211 = vmatprep.subr.mxu1 %v2518_v19  ;;  %v2536_v25 = vld [vmem:[#allocation7 + $0x170] sm:$0xff]  ;;  %v2539_v26 = vld [vmem:[#allocation7 + $0x100] sm:$0xff]  ;;  %p2405_p5 = pnand %p2404_p4, %p2398_p1 }
  0x2f   :  { %141 = vmatpush1.msra.mxu0 %v2488_v8  ;;  %212 = vmatpush1.msra.mxu1 %v2524_v21  ;;  %v2542_v27 = vld [vmem:[#allocation7 + $0x158] sm:$0xff]  ;;  %v2545_v28 = vld [vmem:[#allocation7 + $0xe8] sm:$0xff]  ;;  %v2548_v29 = vld [vmem:[#allocation7 + $0x150] sm:$0xff] }
  0x30   :  { %142 = vmatprep.subr.mxu0 %v2493_v10  ;;  %213 = vmatprep.subr.mxu1 %v2530_v23  ;;  %v2551_v30 = vld [vmem:[#allocation7 + $0xe0] sm:$0xff]  ;;  %v2554_v31 = vld [vmem:[#allocation7 + $0x138] sm:$0xff]  ;;  %v2557_v32 = vld [vmem:[#allocation7 + $0xc8] sm:$0xff] }
  0x31   :  { %143 = vmatpush1.msra.mxu0 %v2499_v12  ;;  %214 = vmatpush1.msra.mxu1 %v2536_v25  ;;  %v2560_v33 = vld [vmem:[#allocation7 + $0x130] sm:$0xff]  ;;  %v2563_v34 = vld [vmem:[#allocation7 + $0xc0] sm:$0xff]  ;;  %v2566_v35 = vld [vmem:[#allocation7 + $0x118] sm:$0xff] }
  0x32   :  { %144 = vmatprep.subr.mxu0 %v2507_v15  ;;  %215 = vmatprep.subr.mxu1 %v2542_v27  ;;  %v2569_v36 = vld [vmem:[#allocation7 + $0xa8] sm:$0xff]  ;;  %v2572_v37 = vld [vmem:[#allocation7 + $0x110] sm:$0xff]  ;;  %v2575_v38 = vld [vmem:[#allocation7 + $0xa0] sm:$0xff] }
  0x33   :  { %145 = vmatpush1.msra.mxu0 %v2513_v17  ;;  %216 = vmatpush1.msra.mxu1 %v2548_v29  ;;  %v2578_v39 = vld [vmem:[#allocation7 + $0xf8] sm:$0xff]  ;;  %v2581_v40 = vld [vmem:[#allocation7 + $0x88] sm:$0xff]  ;;  %v2584_v41 = vld [vmem:[#allocation7 + $0xf0] sm:$0xff] }
  0x34   :  { %146 = vmatprep.subr.mxu0 %v2521_v20  ;;  %217 = vmatprep.subr.mxu1 %v2554_v31  ;;  %v2587_v42 = vld [vmem:[#allocation7 + $0x80] sm:$0xff]  ;;  %v2590_v43 = vld [vmem:[#allocation7 + $0xd8] sm:$0xff]  ;;  %v2593_v44 = vld [vmem:[#allocation7 + $0x68] sm:$0xff] }
  0x35   :  { %147 = vmatpush1.msra.mxu0 %v2527_v22  ;;  %218 = vmatpush1.msra.mxu1 %v2560_v33  ;;  %3367 = vst [vmem:[#allocation16_spill] sm:$0xff] %v2593_v44  ;;  %v2596_v45 = vld [vmem:[#allocation7 + $0xd0] sm:$0xff]  ;;  %v2599_v46 = vld [vmem:[#allocation7 + $0x60] sm:$0xff]  ;;  %v2602_v47 = vld [vmem:[#allocation7 + $0xb8] sm:$0xff] }
  0x36   :  { %148 = vmatprep.subr.mxu0 %v2533_v24  ;;  %219 = vmatprep.subr.mxu1 %v2566_v35  ;;  %3368 = vst [vmem:[#allocation17_spill] sm:$0xff] %v2599_v46  ;;  %v2605_v48 = vld [vmem:[#allocation7 + $0x48] sm:$0xff]  ;;  %v2608_v49 = vld [vmem:[#allocation7 + $0xb0] sm:$0xff]  ;;  %v2611_v50 = vld [vmem:[#allocation7 + $0x40] sm:$0xff] }
  0x37   :  { %149 = vmatpush1.msra.mxu0 %v2539_v26  ;;  %220 = vmatpush1.msra.mxu1 %v2572_v37  ;;  %3369 = vst [vmem:[#allocation18_spill] sm:$0xff] %v2605_v48  ;;  %3370 = vst [vmem:[#allocation19_spill] sm:$0xff] %v2611_v50  ;;  %v2614_v51 = vld [vmem:[#allocation7 + $0x98] sm:$0xff]  ;;  %v2617_v52 = vld [vmem:[#allocation7 + $0x28] sm:$0xff] }
  0x38   :  { %150 = vmatprep.subr.mxu0 %v2545_v28  ;;  %221 = vmatprep.subr.mxu1 %v2578_v39  ;;  %3371 = vst [vmem:[#allocation20_spill] sm:$0xff] %v2617_v52  ;;  %v2620_v53 = vld [vmem:[#allocation7 + $0x90] sm:$0xff]  ;;  %v2623_v54 = vld [vmem:[#allocation7 + $0x20] sm:$0xff]  ;;  %v2626_v55 = vld [vmem:[#allocation7 + $0x78] sm:$0xff] }
  0x39   :  { %151 = vmatpush1.msra.mxu0 %v2551_v30  ;;  %222 = vmatpush1.msra.mxu1 %v2584_v41  ;;  %3372 = vst [vmem:[#allocation21_spill] sm:$0xff] %v2620_v53  ;;  %3373 = vst [vmem:[#allocation22_spill] sm:$0xff] %v2623_v54  ;;  %v2629_v56 = vld [vmem:[#allocation7 + $0x8] sm:$0xff]  ;;  %v2632_v57 = vld [vmem:[#allocation7 + $0x70] sm:$0xff] }
  0x3a   :  { %152 = vmatprep.subr.mxu0 %v2557_v32  ;;  %223 = vmatprep.subr.mxu1 %v2590_v43  ;;  %3374 = vst [vmem:[#allocation23_spill] sm:$0xff] %v2626_v55  ;;  %3375 = vst [vmem:[#allocation24_spill] sm:$0xff] %v2629_v56  ;;  %v2635_v58 = vld [vmem:[#allocation7] sm:$0xff]  ;;  %v2638_v59 = vld [vmem:[#allocation7 + $0x58] sm:$0xff] }
  0x3b   :  { %153 = vmatpush1.msra.mxu0 %v2563_v34  ;;  %224 = vmatpush1.msra.mxu1 %v2596_v45  ;;  %3376 = vst [vmem:[#allocation25_spill] sm:$0xff] %v2632_v57  ;;  %3377 = vst [vmem:[#allocation26_spill] sm:$0xff] %v2635_v58  ;;  %v2642_v60 = vld [vmem:[#allocation7 + $0x50] sm:$0xff]  ;;  %v2646_v61 = vld [vmem:[#allocation7 + $0x38] sm:$0xff] }
  0x3c   :  { %154 = vmatprep.subr.mxu0 %v2569_v36  ;;  %225 = vmatprep.subr.mxu1 %v2602_v47  ;;  %3378 = vst [vmem:[#allocation27_spill] sm:$0xff] %v2638_v59  ;;  %3379 = vst [vmem:[#allocation28_spill] sm:$0xff] %v2642_v60  ;;  %v2650_v62 = vld [vmem:[#allocation7 + $0x30] sm:$0xff]  ;;  %v2654_v63 = vld [vmem:[#allocation7 + $0x18] sm:$0xff] }
  0x3d   :  { %155 = vmatpush1.msra.mxu0 %v2575_v38  ;;  %226 = vmatpush1.msra.mxu1 %v2608_v49  ;;  %3380 = vst [vmem:[#allocation29_spill] sm:$0xff] %v2646_v61  ;;  %3381 = vst [vmem:[#allocation30_spill] sm:$0xff] %v2650_v62 }
  0x3e   :  { %156 = vmatprep.subr.mxu0 %v2581_v40  ;;  %227 = vmatprep.subr.mxu1 %v2614_v51  ;;  %3382 = vst [vmem:[#allocation31_spill] sm:$0xff] %v2654_v63 }
  0x3f   :  { %157 = vmatpush1.msra.mxu0 %v2587_v42  ;;  %228 = vmatpush1.msra.mxu1 %v2620_v53 }
  0x40   :  { %158 = vmatprep.subr.mxu0 %v2593_v44  ;;  %229 = vmatprep.subr.mxu1 %v2626_v55 }
  0x41   :  { %159 = vmatpush1.msra.mxu0 %v2599_v46  ;;  %230 = vmatpush1.msra.mxu1 %v2632_v57 }
  0x42   :  { %160 = vmatprep.subr.mxu0 %v2605_v48  ;;  %231 = vmatprep.subr.mxu1 %v2638_v59 }
  0x43   :  { %161 = vmatpush1.msra.mxu0 %v2611_v50  ;;  %232 = vmatpush1.msra.mxu1 %v2642_v60 }
  0x44   :  { %162 = vmatprep.subr.mxu0 %v2617_v52  ;;  %233 = vmatprep.subr.mxu1 %v2646_v61 }
  0x45   :  { %163 = vmatpush1.msra.mxu0 %v2623_v54  ;;  %v2657_v54 = vld [vmem:[#allocation7 + $0x10] sm:$0xff]  ;;  %234 = vmatpush1.msra.mxu1 %v2650_v62 }
  0x46   :  { %164 = vmatprep.subr.mxu0 %v2629_v56  ;;  %3383 = vst [vmem:[#allocation32_spill] sm:$0xff] %v2657_v54  ;;  %235 = vmatprep.subr.mxu1 %v2654_v63 }
  0x47   :  { %165 = vmatpush1.msra.mxu0 %v2635_v58  ;;  %236 = vmatpush1.msra.mxu1 %v2657_v54 }
  0x48   :  { %199 = vmatmul.mubr.f32.vlgmr.msra.gmra.mxu0 %v3293_v0  ;;  %377 = vmatprep.subr.mxu0 %v2469_v1 }
  0x49   :  { %378 = vmatpush1.msra.mxu0 %v2471_v2  ;;  %270 = vmatmul.mubr.f32.vlgmr.msra.gmra.mxu1 %v3293_v0  ;;  %v3384_v0 = vld [vmem:[#allocation22_spill] sm:$0xff] }
  0x4a   :  { %379 = vmatprep.subr.mxu0 %v2473_v3  ;;  %448 = vmatprep.subr.mxu1 %v2490_v9 }
  0x4b   :  { %380 = vmatpush1.msra.mxu0 %v2476_v4  ;;  %449 = vmatpush1.msra.mxu1 %v2496_v11 }
  0x4c   :  { %381 = vmatprep.subr.mxu0 %v2479_v5  ;;  %450 = vmatprep.subr.mxu1 %v2502_v13 }
  0x4d   :  { %382 = vmatpush1.msra.mxu0 %v2482_v6  ;;  %451 = vmatpush1.msra.mxu1 %v2504_v14 }
  0x4e   :  { %383 = vmatprep.subr.mxu0 %v2485_v7  ;;  %452 = vmatprep.subr.mxu1 %v2510_v16 }
  0x4f   :  { %384 = vmatpush1.msra.mxu0 %v2488_v8  ;;  %453 = vmatpush1.msra.mxu1 %v2516_v18 }
  0x50   :  { %385 = vmatprep.subr.mxu0 %v2493_v10  ;;  %454 = vmatprep.subr.mxu1 %v2518_v19 }
  0x51   :  { %386 = vmatpush1.msra.mxu0 %v2499_v12  ;;  %455 = vmatpush1.msra.mxu1 %v2524_v21 }
  0x52   :  { %387 = vmatprep.subr.mxu0 %v2507_v15  ;;  %456 = vmatprep.subr.mxu1 %v2530_v23 }
  0x53   :  { %388 = vmatpush1.msra.mxu0 %v2513_v17  ;;  %457 = vmatpush1.msra.mxu1 %v2536_v25 }
  0x54   :  { %389 = vmatprep.subr.mxu0 %v2521_v20  ;;  %458 = vmatprep.subr.mxu1 %v2542_v27 }
  0x55   :  { %390 = vmatpush1.msra.mxu0 %v2527_v22  ;;  %459 = vmatpush1.msra.mxu1 %v2548_v29 }
  0x56   :  { %391 = vmatprep.subr.mxu0 %v2533_v24  ;;  %460 = vmatprep.subr.mxu1 %v2554_v31 }
  0x57   :  { %392 = vmatpush1.msra.mxu0 %v2539_v26  ;;  %461 = vmatpush1.msra.mxu1 %v2560_v33 }
  0x58   :  { %393 = vmatprep.subr.mxu0 %v2545_v28  ;;  %462 = vmatprep.subr.mxu1 %v2566_v35 }
  0x59   :  { %394 = vmatpush1.msra.mxu0 %v2551_v30  ;;  %463 = vmatpush1.msra.mxu1 %v2572_v37 }
  0x5a   :  { %395 = vmatprep.subr.mxu0 %v2557_v32  ;;  %464 = vmatprep.subr.mxu1 %v2578_v39 }
  0x5b   :  { %396 = vmatpush1.msra.mxu0 %v2563_v34  ;;  %465 = vmatpush1.msra.mxu1 %v2584_v41 }
  0x5c   :  { %397 = vmatprep.subr.mxu0 %v2569_v36  ;;  %466 = vmatprep.subr.mxu1 %v2590_v43 }
  0x5d   :  { %398 = vmatpush1.msra.mxu0 %v2575_v38  ;;  %467 = vmatpush1.msra.mxu1 %v2596_v45 }
  0x5e   :  { %399 = vmatprep.subr.mxu0 %v2581_v40  ;;  %468 = vmatprep.subr.mxu1 %v2602_v47 }
  0x5f   :  { %400 = vmatpush1.msra.mxu0 %v2587_v42  ;;  %469 = vmatpush1.msra.mxu1 %v2608_v49 }
  0x60   :  { %401 = vmatprep.subr.mxu0 %v2593_v44  ;;  %470 = vmatprep.subr.mxu1 %v2614_v51 }
  0x61   :  { %402 = vmatpush1.msra.mxu0 %v2599_v46  ;;  %471 = vmatpush1.msra.mxu1 %v2620_v53 }
  0x62   :  { %403 = vmatprep.subr.mxu0 %v2605_v48  ;;  %472 = vmatprep.subr.mxu1 %v2626_v55  ;;  %v3385_v48 = vmov 0.0  }
  0x63   :  { %404 = vmatpush1.msra.mxu0 %v2611_v50  ;;  %473 = vmatpush1.msra.mxu1 %v2632_v57 }
  0x64   :  { %405 = vmatprep.subr.mxu0 %v2617_v52  ;;  %474 = vmatprep.subr.mxu1 %v2638_v59  ;;  %v66_v52 = vld [vmem:[#allocation4 + $0x8] sm:$0xff] }
  0x65   :  { %406 = vmatpush1.msra.mxu0 %v3384_v0  ;;  %475 = vmatpush1.msra.mxu1 %v2642_v60  ;;  %v65_v0 = vld [vmem:[#allocation4] sm:$0xff] }
  0x66   :  { %407 = vmatprep.subr.mxu0 %v2629_v56  ;;  %476 = vmatprep.subr.mxu1 %v2646_v61 }
  0x67   :  { %408 = vmatpush1.msra.mxu0 %v2635_v58  ;;  %477 = vmatpush1.msra.mxu1 %v2650_v62 }
  0x68   :  { %441 = vmatprep.mubr.f32.mxu0 %v3385_v48  ;;  %478 = vmatprep.subr.mxu1 %v2654_v63  ;;  %v68_v63 = vld [vmem:[#allocation4 + $0x18] sm:$0xff] }
  0x69   :  { %512 = vmatprep.mubr.f32.mxu1 %v3385_v48  ;;  %479 = vmatpush1.msra.mxu1 %v2657_v54  ;;  %v67_v48 = vld [vmem:[#allocation4 + $0x10] sm:$0xff] }
  0x6a   :  { %620 = vmatprep.subr.mxu0 %v2469_v1  ;;  %691 = vmatprep.subr.mxu1 %v2490_v9 }
 0x108   :  { %v200_v56 = vpop.f32.mrf.mxu0 }
 0x109   :  { %v276_v61 = vadd.f32 %v200_v56, %v65_v0  ;;  %v271_v59 = vpop.f32.mrf.mxu1 }
 0x10a   :  { %v202_v60 = vpop.f32.mrf.mxu0  ;;  %v278_v54 = vadd.f32 %v271_v59, %v67_v48  ;;  %v3401_v59 = vld [vmem:[#allocation26_spill] sm:$0xff] }
 0x10b   :  { %v2122_v58 = vmul.f32 -1.442695, %v276_v61  ;;  %v277_v50 = vadd.f32 %v202_v60, %v66_v52  ;;  %v273_v57 = vpop.f32.mrf.mxu1 }
 0x10c   :  { %v279_v46 = vadd.f32 %v273_v57, %v68_v63  ;;  %v3400_v57 = vld [vmem:[#allocation31_spill] sm:$0xff]  ;;  %v3402_v63 = vmov 0.0  }
 0x10d   :  { %2209 = vpow2.f32 %v2122_v58  ;;  %v2123_v62 = vmul.f32 -1.442695, %v277_v50 }
 0x10e   :  { %v2124_v55 = vmul.f32 -1.442695, %v279_v46 }
 0x10f   :  { %2211 = vpow2.f32 %v2123_v62 }
 0x110   :  { %2213 = vtanh.f32 %v278_v54  ;;  %v3398_v54 = vld [vmem:[#allocation30_spill] sm:$0xff] }
 0x111   :  { %2215 = vpow2.f32 %v2124_v55  ;;  %v3399_v55 = vld [vmem:[#allocation24_spill] sm:$0xff] }
 0x11a   :  { %v2210_v1 = vpop.eup %2209 }
 0x11b   :  { %v283_v44 = vadd.f32 1.0, %v2210_v1 }
 0x11c   :  { %v2212_v9 = vpop.eup %2211 }
 0x11d   :  { %2217 = vrcp.f32 %v283_v44  ;;  %v289_v0 = vadd.f32 1.0, %v2212_v9  ;;  %v2214_v56 = vpop.eup %2213  ;;  %v3386_v9 = vld [vmem:[#allocation21_spill] sm:$0xff]  ;;  %v3397_v44 = vld [vmem:[#allocation22_spill] sm:$0xff] }
 0x11e   :  { %v2216_v52 = vpop.eup %2215 }
 0x11f   :  { %2219 = vrcp.f32 %v289_v0  ;;  %v296_v60 = vadd.f32 1.0, %v2216_v52  ;;  %v3403_v0 = vld [vmem:[#allocation32_spill] sm:$0xff]  ;;  %v3405_v52 = vld [vmem:[#allocation15_spill] sm:$0xff] }
 0x121   :  { %2221 = vrcp.f32 %v296_v60  ;;  %v309_v60 = vld [vmem:[#allocation4 + $0x28] sm:$0xff] }
 0x12a   :  { %v2218_v58 = vpop.eup %2217 }
 0x12b   :  { %v301_v62 = vmul.f32 %v2218_v58, %v2214_v56  ;;  %v3404_v56 = vld [vmem:[#allocation14_spill] sm:$0xff]  ;;  %v308_v58 = vld [vmem:[#allocation4 + $0x20] sm:$0xff] }
 0x12c   :  { %v2220_v50 = vpop.eup %2219 }
 0x12d   :  { %v300_v61 = vmul.f32 0.0, %v2220_v50 }
 0x12e   :  { %v2222_v46 = vpop.eup %2221 }
 0x12f   :  { %v2731_v53 = vadd.f32 %v301_v62, %v300_v61 }
 0x131   :  { %2223 = vtanh.f32 %v2731_v53 }
 0x13e   :  { %v2224_v1 = vpop.eup %2223 }
 0x13f   :  { %v304_v48 = vmul.f32 %v2224_v1, %v2222_v46 }
 0x141   :  { %442 = vmatmul.mubr.f32.vlgmr.msra.gmra.mxu0 %v304_v48  ;;  %513 = vmatmul.mubr.f32.vlgmr.msra.gmra.mxu1 %v304_v48 }
 0x142   :  { %621 = vmatpush1.msra.mxu0 %v2471_v2  ;;  %692 = vmatpush1.msra.mxu1 %v2496_v11 }
 0x143   :  { %622 = vmatprep.subr.mxu0 %v2473_v3  ;;  %693 = vmatprep.subr.mxu1 %v2502_v13 }
 0x144   :  { %623 = vmatpush1.msra.mxu0 %v2476_v4  ;;  %694 = vmatpush1.msra.mxu1 %v2504_v14 }
 0x145   :  { %624 = vmatprep.subr.mxu0 %v2479_v5  ;;  %695 = vmatprep.subr.mxu1 %v2510_v16 }
 0x146   :  { %625 = vmatpush1.msra.mxu0 %v2482_v6  ;;  %696 = vmatpush1.msra.mxu1 %v2516_v18 }
 0x147   :  { %626 = vmatprep.subr.mxu0 %v2485_v7  ;;  %697 = vmatprep.subr.mxu1 %v2518_v19 }
 0x148   :  { %627 = vmatpush1.msra.mxu0 %v2488_v8  ;;  %698 = vmatpush1.msra.mxu1 %v2524_v21 }
 0x149   :  { %628 = vmatprep.subr.mxu0 %v2493_v10  ;;  %699 = vmatprep.subr.mxu1 %v2530_v23 }
 0x14a   :  { %629 = vmatpush1.msra.mxu0 %v2499_v12  ;;  %700 = vmatpush1.msra.mxu1 %v2536_v25 }
 0x14b   :  { %630 = vmatprep.subr.mxu0 %v2507_v15  ;;  %701 = vmatprep.subr.mxu1 %v2542_v27 }
 0x14c   :  { %631 = vmatpush1.msra.mxu0 %v2513_v17  ;;  %702 = vmatpush1.msra.mxu1 %v2548_v29 }
 0x14d   :  { %632 = vmatprep.subr.mxu0 %v2521_v20  ;;  %703 = vmatprep.subr.mxu1 %v2554_v31 }
 0x14e   :  { %633 = vmatpush1.msra.mxu0 %v2527_v22  ;;  %704 = vmatpush1.msra.mxu1 %v2560_v33 }
 0x14f   :  { %634 = vmatprep.subr.mxu0 %v2533_v24  ;;  %705 = vmatprep.subr.mxu1 %v2566_v35  ;;  %v3387_v24 = vld [vmem:[#allocation16_spill] sm:$0xff] }
 0x150   :  { %635 = vmatpush1.msra.mxu0 %v2539_v26  ;;  %706 = vmatpush1.msra.mxu1 %v2572_v37  ;;  %v3388_v26 = vld [vmem:[#allocation23_spill] sm:$0xff] }
 0x151   :  { %636 = vmatprep.subr.mxu0 %v2545_v28  ;;  %707 = vmatprep.subr.mxu1 %v2578_v39  ;;  %v3389_v28 = vld [vmem:[#allocation17_spill] sm:$0xff] }
 0x152   :  { %637 = vmatpush1.msra.mxu0 %v2551_v30  ;;  %708 = vmatpush1.msra.mxu1 %v2584_v41  ;;  %v3390_v30 = vld [vmem:[#allocation25_spill] sm:$0xff] }
 0x153   :  { %638 = vmatprep.subr.mxu0 %v2557_v32  ;;  %709 = vmatprep.subr.mxu1 %v2590_v43  ;;  %v3391_v32 = vld [vmem:[#allocation18_spill] sm:$0xff] }
 0x154   :  { %639 = vmatpush1.msra.mxu0 %v2563_v34  ;;  %710 = vmatpush1.msra.mxu1 %v2596_v45  ;;  %v3392_v34 = vld [vmem:[#allocation27_spill] sm:$0xff] }
 0x155   :  { %640 = vmatprep.subr.mxu0 %v2569_v36  ;;  %711 = vmatprep.subr.mxu1 %v2602_v47  ;;  %v3393_v36 = vld [vmem:[#allocation19_spill] sm:$0xff] }
 0x156   :  { %641 = vmatpush1.msra.mxu0 %v2575_v38  ;;  %712 = vmatpush1.msra.mxu1 %v2608_v49  ;;  %v3394_v38 = vld [vmem:[#allocation28_spill] sm:$0xff] }
 0x157   :  { %642 = vmatprep.subr.mxu0 %v2581_v40  ;;  %713 = vmatprep.subr.mxu1 %v2614_v51  ;;  %v3395_v40 = vld [vmem:[#allocation20_spill] sm:$0xff] }
 0x158   :  { %643 = vmatpush1.msra.mxu0 %v2587_v42  ;;  %714 = vmatpush1.msra.mxu1 %v3386_v9  ;;  %v3396_v42 = vld [vmem:[#allocation29_spill] sm:$0xff] }
 0x159   :  { %644 = vmatprep.subr.mxu0 %v3387_v24  ;;  %715 = vmatprep.subr.mxu1 %v3388_v26 }
 0x15a   :  { %645 = vmatpush1.msra.mxu0 %v3389_v28  ;;  %716 = vmatpush1.msra.mxu1 %v3390_v30  ;;  %v311_v28 = vld [vmem:[#allocation4 + $0x38] sm:$0xff] }
 0x15b   :  { %646 = vmatprep.subr.mxu0 %v3391_v32  ;;  %717 = vmatprep.subr.mxu1 %v3392_v34 }
 0x15c   :  { %647 = vmatpush1.msra.mxu0 %v3393_v36  ;;  %718 = vmatpush1.msra.mxu1 %v3394_v38 }
 0x15d   :  { %648 = vmatprep.subr.mxu0 %v3395_v40  ;;  %719 = vmatprep.subr.mxu1 %v3396_v42  ;;  %v310_v40 = vld [vmem:[#allocation4 + $0x30] sm:$0xff] }
 0x15e   :  { %649 = vmatpush1.msra.mxu0 %v3397_v44  ;;  %720 = vmatpush1.msra.mxu1 %v3398_v54 }
 0x15f   :  { %650 = vmatprep.subr.mxu0 %v3399_v55  ;;  %721 = vmatprep.subr.mxu1 %v3400_v57 }
 0x160   :  { %651 = vmatpush1.msra.mxu0 %v3401_v59  ;;  %684 = vmatprep.mubr.f32.mxu0 %v3402_v63 }
 0x161   :  { %722 = vmatpush1.msra.mxu1 %v3403_v0  ;;  %755 = vmatprep.mubr.f32.mxu1 %v3402_v63 }
 0x162   :  { %863 = vmatprep.subr.mxu0 %v3404_v56  ;;  %934 = vmatprep.subr.mxu1 %v3405_v52 }
 0x201   :  { %v443_v50 = vpop.f32.mrf.mxu0  ;;  %v514_v48 = vpop.f32.mrf.mxu1 }
 0x202   :  { %v519_v61 = vadd.f32 %v443_v50, %v308_v58  ;;  %v521_v59 = vadd.f32 %v514_v48, %v310_v40 }
 0x203   :  { %v445_v62 = vpop.f32.mrf.mxu0  ;;  %v516_v32 = vpop.f32.mrf.mxu1 }
 0x204   :  { %v2125_v46 = vmul.f32 -1.442695, %v519_v61  ;;  %v520_v1 = vadd.f32 %v445_v62, %v309_v60  ;;  %v522_v36 = vadd.f32 %v516_v32, %v311_v28 }
 0x206   :  { %2225 = vpow2.f32 %v2125_v46  ;;  %v2126_v24 = vmul.f32 -1.442695, %v520_v1  ;;  %v2127_v44 = vmul.f32 -1.442695, %v522_v36 }
 0x208   :  { %2227 = vpow2.f32 %v2126_v24 }
 0x209   :  { %2229 = vpow2.f32 %v2127_v44 }
 0x213   :  { %v2226_v55 = vpop.eup %2225 }
 0x214   :  { %v526_v56 = vadd.f32 1.0, %v2226_v55 }
 0x215   :  { %v2228_v52 = vpop.eup %2227 }
 0x216   :  { %2231 = vrcp.f32 %v526_v56  ;;  %v532_v0 = vadd.f32 1.0, %v2228_v52  ;;  %v2230_v58 = vpop.eup %2229  ;;  %v2912_v56 = vld [vmem:[#allocation7 + $0x1f8] sm:$0xff]  ;;  %v2916_v52 = vld [vmem:[#allocation7 + $0x1e0] sm:$0xff] }
 0x217   :  { %2233 = vtanh.f32 %v521_v59  ;;  %v539_v62 = vadd.f32 1.0, %v2230_v58  ;;  %v2910_v59 = vld [vmem:[#allocation7 + $0x1e8] sm:$0xff]  ;;  %3417 = vst [vmem:[#allocation29_spill] sm:$0xff] %v2912_v56  ;;  %v2918_v58 = vld [vmem:[#allocation7 + $0x1f0] sm:$0xff] }
 0x218   :  { %2235 = vrcp.f32 %v532_v0  ;;  %3416 = vst [vmem:[#allocation20_spill] sm:$0xff] %v2910_v59 }
 0x219   :  { %2237 = vrcp.f32 %v539_v62  ;;  %v2930_v62 = vld [vmem:[#allocation7 + $0x1d0] sm:$0xff] }
 0x223   :  { %v2232_v50 = vpop.eup %2231 }
 0x224   :  { %v2234_v60 = vpop.eup %2233 }
 0x225   :  { %v2236_v61 = vpop.eup %2235  ;;  %v544_v46 = vmul.f32 %v2234_v60, %v2232_v50  ;;  %v2922_v50 = vld [vmem:[#allocation7 + $0x1c8] sm:$0xff]  ;;  %v2924_v60 = vld [vmem:[#allocation7 + $0x1d8] sm:$0xff] }
 0x226   :  { %v543_v1 = vmul.f32 %v2236_v61, %v2731_v53  ;;  %v2238_v48 = vpop.eup %2237  ;;  %v2928_v61 = vld [vmem:[#allocation7 + $0x1c0] sm:$0xff] }
 0x228   :  { %v2801_v24 = vadd.f32 %v544_v46, %v543_v1  ;;  %v2934_v46 = vld [vmem:[#allocation7 + $0x1a8] sm:$0xff]  ;;  %v2936_v1 = vld [vmem:[#allocation7 + $0x1b8] sm:$0xff] }
 0x22a   :  { %2239 = vtanh.f32 %v2801_v24 }
 0x237   :  { %v2240_v28 = vpop.eup %2239 }
 0x238   :  { %v547_v32 = vmul.f32 %v2240_v28, %v2238_v48  ;;  %v2942_v48 = vld [vmem:[#allocation7 + $0x1b0] sm:$0xff]  ;;  %v2946_v28 = vld [vmem:[#allocation7 + $0x188] sm:$0xff] }
 0x23a   :  { %685 = vmatmul.mubr.f32.vlgmr.msra.gmra.mxu0 %v547_v32  ;;  %756 = vmatmul.mubr.f32.vlgmr.msra.gmra.mxu1 %v547_v32  ;;  %v2948_v32 = vld [vmem:[#allocation7 + $0x198] sm:$0xff] }
 0x23b   :  { %864 = vmatpush1.msra.mxu0 %v2471_v2  ;;  %935 = vmatpush1.msra.mxu1 %v2496_v11  ;;  %v3406_v2 = vld [vmem:[#allocation32_spill] sm:$0xff]  ;;  %v2869_v11 = vld [vmem:[#allocation7 + $0xa0] sm:$0xff] }
 0x23c   :  { %865 = vmatprep.subr.mxu0 %v2473_v3  ;;  %936 = vmatprep.subr.mxu1 %v2502_v13  ;;  %v2850_v3 = vld [vmem:[#allocation7 + $0x108] sm:$0xff]  ;;  %v2875_v13 = vld [vmem:[#allocation7 + $0x80] sm:$0xff] }
 0x23d   :  { %866 = vmatpush1.msra.mxu0 %v2476_v4  ;;  %937 = vmatpush1.msra.mxu1 %v2504_v14  ;;  %v2852_v4 = vld [vmem:[#allocation7 + $0x100] sm:$0xff]  ;;  %3407 = vst [vmem:[#allocation21_spill] sm:$0xff] %v2875_v13  ;;  %v2878_v14 = vld [vmem:[#allocation7 + $0x68] sm:$0xff] }
 0x23e   :  { %867 = vmatprep.subr.mxu0 %v2479_v5  ;;  %938 = vmatprep.subr.mxu1 %v2510_v16  ;;  %v2854_v5 = vld [vmem:[#allocation7 + $0xe8] sm:$0xff]  ;;  %3408 = vst [vmem:[#allocation16_spill] sm:$0xff] %v2878_v14 }
 0x23f   :  { %868 = vmatpush1.msra.mxu0 %v2482_v6  ;;  %939 = vmatpush1.msra.mxu1 %v2516_v18  ;;  %v2857_v6 = vld [vmem:[#allocation7 + $0xe0] sm:$0xff]  ;;  %v2884_v16 = vld [vmem:[#allocation7 + $0x48] sm:$0xff] }
 0x240   :  { %869 = vmatprep.subr.mxu0 %v2485_v7  ;;  %940 = vmatprep.subr.mxu1 %v2518_v19  ;;  %v2860_v7 = vld [vmem:[#allocation7 + $0xc8] sm:$0xff]  ;;  %3410 = vst [vmem:[#allocation17_spill] sm:$0xff] %v2884_v16  ;;  %v2893_v19 = vld [vmem:[#allocation7 + $0x20] sm:$0xff] }
 0x241   :  { %870 = vmatpush1.msra.mxu0 %v2488_v8  ;;  %941 = vmatpush1.msra.mxu1 %v2524_v21  ;;  %v2863_v8 = vld [vmem:[#allocation7 + $0xc0] sm:$0xff]  ;;  %v2890_v18 = vld [vmem:[#allocation7 + $0x28] sm:$0xff]  ;;  %3413 = vst [vmem:[#allocation27_spill] sm:$0xff] %v2893_v19 }
 0x242   :  { %871 = vmatprep.subr.mxu0 %v2493_v10  ;;  %942 = vmatprep.subr.mxu1 %v2530_v23  ;;  %v2866_v10 = vld [vmem:[#allocation7 + $0xa8] sm:$0xff]  ;;  %3412 = vst [vmem:[#allocation18_spill] sm:$0xff] %v2890_v18  ;;  %v2899_v21 = vld [vmem:[#allocation7] sm:$0xff] }
 0x243   :  { %872 = vmatpush1.msra.mxu0 %v2499_v12  ;;  %943 = vmatpush1.msra.mxu1 %v2536_v25  ;;  %v2872_v12 = vld [vmem:[#allocation7 + $0x88] sm:$0xff]  ;;  %3415 = vst [vmem:[#allocation28_spill] sm:$0xff] %v2899_v21 }
 0x244   :  { %873 = vmatprep.subr.mxu0 %v2507_v15  ;;  %944 = vmatprep.subr.mxu1 %v2542_v27  ;;  %v2881_v15 = vld [vmem:[#allocation7 + $0x60] sm:$0xff]  ;;  %v552_v25 = vld [vmem:[#allocation4 + $0x48] sm:$0xff] }
 0x245   :  { %874 = vmatpush1.msra.mxu0 %v2513_v17  ;;  %945 = vmatpush1.msra.mxu1 %v2548_v29  ;;  %3409 = vst [vmem:[#allocation23_spill] sm:$0xff] %v2881_v15  ;;  %v2887_v17 = vld [vmem:[#allocation7 + $0x40] sm:$0xff] }
 0x246   :  { %875 = vmatprep.subr.mxu0 %v2521_v20  ;;  %946 = vmatprep.subr.mxu1 %v2554_v31  ;;  %3411 = vst [vmem:[#allocation25_spill] sm:$0xff] %v2887_v17  ;;  %v2896_v20 = vld [vmem:[#allocation7 + $0x8] sm:$0xff] }
 0x247   :  { %876 = vmatpush1.msra.mxu0 %v2527_v22  ;;  %947 = vmatpush1.msra.mxu1 %v2560_v33  ;;  %3414 = vst [vmem:[#allocation19_spill] sm:$0xff] %v2896_v20  ;;  %v551_v22 = vld [vmem:[#allocation4 + $0x40] sm:$0xff] }
 0x248   :  { %948 = vmatprep.subr.mxu1 %v2566_v35  ;;  %927 = vmatprep.mubr.f32.mxu0 %v3402_v63 }
 0x249   :  { %949 = vmatpush1.msra.mxu1 %v2572_v37  ;;  %998 = vmatprep.mubr.f32.mxu1 %v3402_v63 }
 0x24a   :  { %950 = vmatprep.subr.mxu1 %v2578_v39  ;;  %877 = vmatprep.subr.mxu0 %v2850_v3  ;;  %v554_v39 = vld [vmem:[#allocation4 + $0x58] sm:$0xff] }
 0x24b   :  { %951 = vmatpush1.msra.mxu1 %v2584_v41  ;;  %878 = vmatpush1.msra.mxu0 %v2852_v4 }
 0x24c   :  { %952 = vmatprep.subr.mxu1 %v2590_v43  ;;  %879 = vmatprep.subr.mxu0 %v2854_v5 }
 0x24d   :  { %953 = vmatpush1.msra.mxu1 %v2596_v45  ;;  %880 = vmatpush1.msra.mxu0 %v2857_v6  ;;  %v553_v45 = vld [vmem:[#allocation4 + $0x50] sm:$0xff] }
 0x24e   :  { %954 = vmatprep.subr.mxu1 %v2602_v47  ;;  %881 = vmatprep.subr.mxu0 %v2860_v7 }
 0x24f   :  { %955 = vmatpush1.msra.mxu1 %v2608_v49  ;;  %882 = vmatpush1.msra.mxu0 %v2863_v8 }
 0x250   :  { %956 = vmatprep.subr.mxu1 %v2614_v51  ;;  %883 = vmatprep.subr.mxu0 %v2866_v10 }
 0x251   :  { %957 = vmatpush1.msra.mxu1 %v3386_v9  ;;  %884 = vmatpush1.msra.mxu0 %v2869_v11 }
 0x252   :  { %958 = vmatprep.subr.mxu1 %v3388_v26  ;;  %885 = vmatprep.subr.mxu0 %v2872_v12 }
 0x253   :  { %959 = vmatpush1.msra.mxu1 %v3390_v30  ;;  %886 = vmatpush1.msra.mxu0 %v2875_v13 }
 0x254   :  { %960 = vmatprep.subr.mxu1 %v3392_v34  ;;  %887 = vmatprep.subr.mxu0 %v2878_v14 }
 0x255   :  { %961 = vmatpush1.msra.mxu1 %v3394_v38  ;;  %888 = vmatpush1.msra.mxu0 %v2881_v15 }
 0x256   :  { %962 = vmatprep.subr.mxu1 %v3396_v42  ;;  %889 = vmatprep.subr.mxu0 %v2884_v16 }
 0x257   :  { %963 = vmatpush1.msra.mxu1 %v3398_v54  ;;  %890 = vmatpush1.msra.mxu0 %v2887_v17 }
 0x258   :  { %964 = vmatprep.subr.mxu1 %v3400_v57  ;;  %891 = vmatprep.subr.mxu0 %v2890_v18 }
 0x259   :  { %965 = vmatpush1.msra.mxu1 %v3406_v2  ;;  %892 = vmatpush1.msra.mxu0 %v2893_v19  ;;  %v2952_v2 = vld [vmem:[#allocation7 + $0x180] sm:$0xff] }
 0x25a   :  { %893 = vmatprep.subr.mxu0 %v2896_v20  ;;  %1177 = vmatprep.subr.mxu1 %v2912_v56 }
 0x25b   :  { %894 = vmatpush1.msra.mxu0 %v2899_v21 }
 0x25c   :  { %1106 = vmatprep.subr.mxu0 %v2910_v59 }
 0x2fa   :  { %v686_v23 = vpop.f32.mrf.mxu0  ;;  %v757_v35 = vpop.f32.mrf.mxu1 }
 0x2fb   :  { %v762_v27 = vadd.f32 %v686_v23, %v551_v22  ;;  %v764_v51 = vadd.f32 %v757_v35, %v553_v45  ;;  %v2954_v22 = vld [vmem:[#allocation7 + $0x190] sm:$0xff]  ;;  %v2958_v23 = vld [vmem:[#allocation7 + $0x168] sm:$0xff]  ;;  %v2976_v35 = vld [vmem:[#allocation7 + $0x140] sm:$0xff] }
 0x2fc   :  { %v688_v29 = vpop.f32.mrf.mxu0  ;;  %v759_v41 = vpop.f32.mrf.mxu1  ;;  %v2990_v45 = vld [vmem:[#allocation7 + $0x130] sm:$0xff] }
 0x2fd   :  { %v2128_v31 = vmul.f32 -1.442695, %v762_v27  ;;  %v763_v33 = vadd.f32 %v688_v29, %v552_v25  ;;  %v765_v43 = vadd.f32 %v759_v41, %v554_v39  ;;  %v2960_v25 = vld [vmem:[#allocation7 + $0x178] sm:$0xff]  ;;  %v2964_v27 = vld [vmem:[#allocation7 + $0x160] sm:$0xff]  ;;  %v2966_v29 = vld [vmem:[#allocation7 + $0x170] sm:$0xff] }
 0x2fe   :  { %v2982_v39 = vld [vmem:[#allocation7 + $0x128] sm:$0xff]  ;;  %v2984_v41 = vld [vmem:[#allocation7 + $0x138] sm:$0xff] }
 0x2ff   :  { %2241 = vpow2.f32 %v2128_v31  ;;  %v2129_v37 = vmul.f32 -1.442695, %v763_v33  ;;  %v2130_v47 = vmul.f32 -1.442695, %v765_v43  ;;  %v2970_v31 = vld [vmem:[#allocation7 + $0x148] sm:$0xff]  ;;  %v2972_v33 = vld [vmem:[#allocation7 + $0x158] sm:$0xff] }
 0x300   :  { %v2988_v43 = vld [vmem:[#allocation7 + $0x120] sm:$0xff] }
 0x301   :  { %2243 = vpow2.f32 %v2129_v37  ;;  %v2978_v37 = vld [vmem:[#allocation7 + $0x150] sm:$0xff] }
 0x302   :  { %2245 = vpow2.f32 %v2130_v47  ;;  %v2994_v47 = vld [vmem:[#allocation7 + $0x118] sm:$0xff] }
 0x30c   :  { %v2242_v49 = vpop.eup %2241 }
 0x30d   :  { %v769_v53 = vadd.f32 1.0, %v2242_v49  ;;  %v2996_v49 = vld [vmem:[#allocation7 + $0x110] sm:$0xff] }
 0x30e   :  { %v2244_v9 = vpop.eup %2243 }
 0x30f   :  { %2247 = vrcp.f32 %v769_v53  ;;  %v775_v26 = vadd.f32 1.0, %v2244_v9  ;;  %v2246_v30 = vpop.eup %2245  ;;  %v3002_v53 = vld [vmem:[#allocation7 + $0xf0] sm:$0xff]  ;;  %v3006_v9 = vld [vmem:[#allocation7 + $0xd8] sm:$0xff] }
 0x310   :  { %2249 = vtanh.f32 %v764_v51  ;;  %v782_v54 = vadd.f32 1.0, %v2246_v30  ;;  %v2998_v51 = vld [vmem:[#allocation7 + $0xf8] sm:$0xff] }
 0x311   :  { %2251 = vrcp.f32 %v775_v26  ;;  %v3010_v26 = vld [vmem:[#allocation7 + $0xd0] sm:$0xff]  ;;  %v3014_v30 = vld [vmem:[#allocation7 + $0xb8] sm:$0xff] }
 0x312   :  { %2253 = vrcp.f32 %v782_v54  ;;  %v3030_v54 = vld [vmem:[#allocation7 + $0x78] sm:$0xff] }
 0x313   :  { %3419 = vst [vmem:[#allocation30_spill] sm:$0xff] %v3030_v54 }
 0x31c   :  { %v2248_v34 = vpop.eup %2247 }
 0x31d   :  { %v2250_v38 = vpop.eup %2249 }
 0x31e   :  { %v2252_v42 = vpop.eup %2251  ;;  %v787_v57 = vmul.f32 %v2250_v38, %v2248_v34  ;;  %v3018_v34 = vld [vmem:[#allocation7 + $0xb0] sm:$0xff]  ;;  %v3022_v38 = vld [vmem:[#allocation7 + $0x98] sm:$0xff] }
 0x31f   :  { %v786_v0 = vmul.f32 %v2252_v42, %v2801_v24  ;;  %v2254_v40 = vpop.eup %2253  ;;  %v2940_v24 = vld [vmem:[#allocation7 + $0x1a0] sm:$0xff]  ;;  %v3026_v42 = vld [vmem:[#allocation7 + $0x90] sm:$0xff] }
 0x320   :  { %3418 = vst [vmem:[#allocation22_spill] sm:$0xff] %v3026_v42 }
 0x321   :  { %v2905_v36 = vadd.f32 %v787_v57, %v786_v0  ;;  %v3034_v57 = vld [vmem:[#allocation7 + $0x70] sm:$0xff]  ;;  %v3038_v0 = vld [vmem:[#allocation7 + $0x58] sm:$0xff] }
 0x322   :  { %3420 = vst [vmem:[#allocation24_spill] sm:$0xff] %v3034_v57  ;;  %3421 = vst [vmem:[#allocation31_spill] sm:$0xff] %v3038_v0 }
 0x323   :  { %2255 = vtanh.f32 %v2905_v36 }
 0x330   :  { %v2256_v44 = vpop.eup %2255 }
 0x331   :  { %v790_v55 = vmul.f32 %v2256_v44, %v2254_v40  ;;  %v3042_v40 = vld [vmem:[#allocation7 + $0x50] sm:$0xff]  ;;  %v3046_v44 = vld [vmem:[#allocation7 + $0x38] sm:$0xff] }
 0x332   :  { %3422 = vst [vmem:[#allocation26_spill] sm:$0xff] %v3042_v40  ;;  %3423 = vst [vmem:[#allocation14_spill] sm:$0xff] %v3046_v44 }
 0x333   :  { %928 = vmatmul.mubr.f32.vlgmr.msra.gmra.mxu0 %v790_v55  ;;  %999 = vmatmul.mubr.f32.vlgmr.msra.gmra.mxu1 %v790_v55  ;;  %v3050_v55 = vld [vmem:[#allocation7 + $0x30] sm:$0xff] }
 0x334   :  { %1170 = vmatprep.mubr.f32.mxu0 %v3402_v63  ;;  %1241 = vmatprep.mubr.f32.mxu1 %v3402_v63  ;;  %3424 = vst [vmem:[#allocation15_spill] sm:$0xff] %v3050_v55  ;;  %v3054_v63 = vld [vmem:[#allocation7 + $0x18] sm:$0xff] }
 0x335   :  { %1107 = vmatpush1.msra.mxu0 %v2916_v52  ;;  %1178 = vmatpush1.msra.mxu1 %v2918_v58  ;;  %3425 = vst [vmem:[#allocation32_spill] sm:$0xff] %v3054_v63 }
 0x336   :  { %1108 = vmatprep.subr.mxu0 %v2922_v50  ;;  %1179 = vmatprep.subr.mxu1 %v2924_v60 }
 0x337   :  { %1109 = vmatpush1.msra.mxu0 %v2928_v61  ;;  %1180 = vmatpush1.msra.mxu1 %v2930_v62 }
 0x338   :  { %1110 = vmatprep.subr.mxu0 %v2934_v46  ;;  %1181 = vmatprep.subr.mxu1 %v2936_v1 }
 0x339   :  { %1111 = vmatpush1.msra.mxu0 %v2940_v24  ;;  %1182 = vmatpush1.msra.mxu1 %v2942_v48 }
 0x33a   :  { %1112 = vmatprep.subr.mxu0 %v2946_v28  ;;  %1183 = vmatprep.subr.mxu1 %v2948_v32 }
 0x33b   :  { %1113 = vmatpush1.msra.mxu0 %v2952_v2  ;;  %1184 = vmatpush1.msra.mxu1 %v2954_v22 }
 0x33c   :  { %1114 = vmatprep.subr.mxu0 %v2958_v23  ;;  %1185 = vmatprep.subr.mxu1 %v2960_v25 }
 0x33d   :  { %1115 = vmatpush1.msra.mxu0 %v2964_v27  ;;  %1186 = vmatpush1.msra.mxu1 %v2966_v29 }
 0x33e   :  { %1116 = vmatprep.subr.mxu0 %v2970_v31  ;;  %1187 = vmatprep.subr.mxu1 %v2972_v33 }
 0x33f   :  { %1117 = vmatpush1.msra.mxu0 %v2976_v35  ;;  %1188 = vmatpush1.msra.mxu1 %v2978_v37 }
 0x340   :  { %1118 = vmatprep.subr.mxu0 %v2982_v39  ;;  %1189 = vmatprep.subr.mxu1 %v2984_v41 }
 0x341   :  { %1119 = vmatpush1.msra.mxu0 %v2988_v43  ;;  %1190 = vmatpush1.msra.mxu1 %v2990_v45 }
 0x342   :  { %1120 = vmatprep.subr.mxu0 %v2850_v3  ;;  %1191 = vmatprep.subr.mxu1 %v2994_v47 }
 0x343   :  { %1121 = vmatpush1.msra.mxu0 %v2852_v4  ;;  %1192 = vmatpush1.msra.mxu1 %v2996_v49 }
 0x344   :  { %1122 = vmatprep.subr.mxu0 %v2854_v5  ;;  %1193 = vmatprep.subr.mxu1 %v2998_v51 }
 0x345   :  { %1123 = vmatpush1.msra.mxu0 %v2857_v6  ;;  %1194 = vmatpush1.msra.mxu1 %v3002_v53 }
 0x346   :  { %1124 = vmatprep.subr.mxu0 %v2860_v7  ;;  %1195 = vmatprep.subr.mxu1 %v3006_v9 }
 0x347   :  { %1125 = vmatpush1.msra.mxu0 %v2863_v8  ;;  %1196 = vmatpush1.msra.mxu1 %v3010_v26 }
 0x348   :  { %1126 = vmatprep.subr.mxu0 %v2866_v10  ;;  %1197 = vmatprep.subr.mxu1 %v3014_v30 }
 0x349   :  { %1127 = vmatpush1.msra.mxu0 %v2869_v11  ;;  %1198 = vmatpush1.msra.mxu1 %v3018_v34 }
 0x34a   :  { %1128 = vmatprep.subr.mxu0 %v2872_v12  ;;  %1199 = vmatprep.subr.mxu1 %v3022_v38 }
 0x34b   :  { %1129 = vmatpush1.msra.mxu0 %v2875_v13  ;;  %1200 = vmatpush1.msra.mxu1 %v3026_v42 }
 0x34c   :  { %1130 = vmatprep.subr.mxu0 %v2878_v14  ;;  %1201 = vmatprep.subr.mxu1 %v3030_v54  ;;  %v796_v54 = vld [vmem:[#allocation4 + $0x70] sm:$0xff] }
 0x34d   :  { %1131 = vmatpush1.msra.mxu0 %v2881_v15  ;;  %1202 = vmatpush1.msra.mxu1 %v3034_v57  ;;  %v3058_v15 = vld [vmem:[#allocation7 + $0x10] sm:$0xff] }
 0x34e   :  { %1132 = vmatprep.subr.mxu0 %v2884_v16  ;;  %1203 = vmatprep.subr.mxu1 %v3038_v0  ;;  %3426 = vst [vmem:[#allocation33_spill] sm:$0xff] %v3058_v15 }
 0x34f   :  { %1133 = vmatpush1.msra.mxu0 %v2887_v17  ;;  %1204 = vmatpush1.msra.mxu1 %v3042_v40  ;;  %v795_v40 = vld [vmem:[#allocation4 + $0x68] sm:$0xff] }
 0x350   :  { %1134 = vmatprep.subr.mxu0 %v2890_v18  ;;  %1205 = vmatprep.subr.mxu1 %v3046_v44  ;;  %v794_v18 = vld [vmem:[#allocation4 + $0x60] sm:$0xff] }
 0x351   :  { %1135 = vmatpush1.msra.mxu0 %v2893_v19  ;;  %1206 = vmatpush1.msra.mxu1 %v3050_v55 }
 0x352   :  { %1136 = vmatprep.subr.mxu0 %v2896_v20  ;;  %1207 = vmatprep.subr.mxu1 %v3054_v63  ;;  %v797_v63 = vld [vmem:[#allocation4 + $0x78] sm:$0xff] }
 0x353   :  { %1137 = vmatpush1.msra.mxu0 %v2899_v21  ;;  %1208 = vmatpush1.msra.mxu1 %v3058_v15 }
 0x354   :  { %1349 = vmatprep.subr.mxu0 %v2910_v59  ;;  %1420 = vmatprep.subr.mxu1 %v2912_v56 }
 0x3f3   :  { %v929_v44 = vpop.f32.mrf.mxu0  ;;  %v1000_v55 = vpop.f32.mrf.mxu1 }
 0x3f4   :  { %v1005_v17 = vadd.f32 %v929_v44, %v794_v18  ;;  %v1007_v59 = vadd.f32 %v1000_v55, %v796_v54  ;;  %v3432_v54 = vld [vmem:[#allocation24_spill] sm:$0xff]  ;;  %v3434_v44 = vld [vmem:[#allocation31_spill] sm:$0xff]  ;;  %v3435_v55 = vld [vmem:[#allocation25_spill] sm:$0xff] }
 0x3f5   :  { %v931_v0 = vpop.f32.mrf.mxu0  ;;  %v1002_v57 = vpop.f32.mrf.mxu1 }
 0x3f6   :  { %v2131_v19 = vmul.f32 -1.442695, %v1005_v17  ;;  %v1006_v16 = vadd.f32 %v931_v0, %v795_v40  ;;  %v1008_v21 = vadd.f32 %v1002_v57, %v797_v63  ;;  %v3433_v57 = vld [vmem:[#allocation17_spill] sm:$0xff] }
 0x3f8   :  { %2257 = vpow2.f32 %v2131_v19  ;;  %v2132_v20 = vmul.f32 -1.442695, %v1006_v16  ;;  %v2133_v15 = vmul.f32 -1.442695, %v1008_v21 }
 0x3fa   :  { %2259 = vpow2.f32 %v2132_v20 }
 0x3fb   :  { %2261 = vpow2.f32 %v2133_v15 }
 0x405   :  { %v2258_v14 = vpop.eup %2257 }
 0x406   :  { %v1012_v42 = vadd.f32 1.0, %v2258_v14 }
 0x407   :  { %v2260_v56 = vpop.eup %2259 }
 0x408   :  { %2263 = vrcp.f32 %v1012_v42  ;;  %v1018_v13 = vadd.f32 1.0, %v2260_v56  ;;  %v2262_v17 = vpop.eup %2261  ;;  %v3430_v56 = vld [vmem:[#allocation30_spill] sm:$0xff]  ;;  %v3431_v42 = vld [vmem:[#allocation23_spill] sm:$0xff] }
 0x409   :  { %2265 = vtanh.f32 %v1007_v59  ;;  %v1025_v16 = vadd.f32 1.0, %v2262_v17  ;;  %v3429_v59 = vld [vmem:[#allocation16_spill] sm:$0xff]  ;;  %v3436_v17 = vld [vmem:[#allocation26_spill] sm:$0xff] }
 0x40a   :  { %2267 = vrcp.f32 %v1018_v13  ;;  %v3427_v13 = vld [vmem:[#allocation21_spill] sm:$0xff] }
 0x40b   :  { %2269 = vrcp.f32 %v1025_v16  ;;  %v3440_v16 = vld [vmem:[#allocation15_spill] sm:$0xff] }
 0x415   :  { %v2264_v18 = vpop.eup %2263 }
 0x416   :  { %v2266_v19 = vpop.eup %2265 }
 0x417   :  { %v2268_v0 = vpop.eup %2267  ;;  %v1030_v20 = vmul.f32 %v2266_v19, %v2264_v18  ;;  %v3437_v18 = vld [vmem:[#allocation18_spill] sm:$0xff] }
 0x418   :  { %v1029_v40 = vmul.f32 %v2268_v0, %v2905_v36  ;;  %v2270_v14 = vpop.eup %2269  ;;  %v3428_v36 = vld [vmem:[#allocation22_spill] sm:$0xff]  ;;  %v3439_v0 = vld [vmem:[#allocation27_spill] sm:$0xff] }
 0x419   :  { %v3438_v19 = vld [vmem:[#allocation14_spill] sm:$0xff] }
 0x41a   :  { %v3069_v63 = vadd.f32 %v1030_v20, %v1029_v40  ;;  %v3441_v20 = vld [vmem:[#allocation19_spill] sm:$0xff]  ;;  %v3442_v40 = vld [vmem:[#allocation32_spill] sm:$0xff] }
 0x41c   :  { %2271 = vtanh.f32 %v3069_v63 }
 0x429   :  { %v2272_v21 = vpop.eup %2271 }
 0x42a   :  { %v1033_v15 = vmul.f32 %v2272_v21, %v2270_v14  ;;  %v3443_v14 = vld [vmem:[#allocation28_spill] sm:$0xff]  ;;  %v3444_v21 = vmov 0.0  }
 0x42c   :  { %1171 = vmatmul.mubr.f32.vlgmr.msra.gmra.mxu0 %v1033_v15  ;;  %1242 = vmatmul.mubr.f32.vlgmr.msra.gmra.mxu1 %v1033_v15  ;;  %v3445_v15 = vld [vmem:[#allocation33_spill] sm:$0xff] }
 0x42d   :  { %1350 = vmatpush1.msra.mxu0 %v2916_v52  ;;  %1421 = vmatpush1.msra.mxu1 %v2918_v58 }
 0x42e   :  { %1351 = vmatprep.subr.mxu0 %v2922_v50  ;;  %1422 = vmatprep.subr.mxu1 %v2924_v60 }
 0x42f   :  { %1352 = vmatpush1.msra.mxu0 %v2928_v61  ;;  %1423 = vmatpush1.msra.mxu1 %v2930_v62 }
 0x430   :  { %1353 = vmatprep.subr.mxu0 %v2934_v46  ;;  %1424 = vmatprep.subr.mxu1 %v2936_v1 }
 0x431   :  { %1354 = vmatpush1.msra.mxu0 %v2940_v24  ;;  %1425 = vmatpush1.msra.mxu1 %v2942_v48 }
 0x432   :  { %1355 = vmatprep.subr.mxu0 %v2946_v28  ;;  %1426 = vmatprep.subr.mxu1 %v2948_v32 }
 0x433   :  { %1356 = vmatpush1.msra.mxu0 %v2952_v2  ;;  %1427 = vmatpush1.msra.mxu1 %v2954_v22 }
 0x434   :  { %1357 = vmatprep.subr.mxu0 %v2958_v23  ;;  %1428 = vmatprep.subr.mxu1 %v2960_v25 }
 0x435   :  { %1358 = vmatpush1.msra.mxu0 %v2964_v27  ;;  %1429 = vmatpush1.msra.mxu1 %v2966_v29 }
 0x436   :  { %1359 = vmatprep.subr.mxu0 %v2970_v31  ;;  %1430 = vmatprep.subr.mxu1 %v2972_v33 }
 0x437   :  { %1360 = vmatpush1.msra.mxu0 %v2976_v35  ;;  %1431 = vmatpush1.msra.mxu1 %v2978_v37 }
 0x438   :  { %1361 = vmatprep.subr.mxu0 %v2982_v39  ;;  %1432 = vmatprep.subr.mxu1 %v2984_v41 }
 0x439   :  { %1362 = vmatpush1.msra.mxu0 %v2988_v43  ;;  %1433 = vmatpush1.msra.mxu1 %v2990_v45 }
 0x43a   :  { %1363 = vmatprep.subr.mxu0 %v2850_v3  ;;  %1434 = vmatprep.subr.mxu1 %v2994_v47 }
 0x43b   :  { %1364 = vmatpush1.msra.mxu0 %v2852_v4  ;;  %1435 = vmatpush1.msra.mxu1 %v2996_v49 }
 0x43c   :  { %1365 = vmatprep.subr.mxu0 %v2854_v5  ;;  %1436 = vmatprep.subr.mxu1 %v2998_v51 }
 0x43d   :  { %1366 = vmatpush1.msra.mxu0 %v2857_v6  ;;  %1437 = vmatpush1.msra.mxu1 %v3002_v53 }
 0x43e   :  { %1367 = vmatprep.subr.mxu0 %v2860_v7  ;;  %1438 = vmatprep.subr.mxu1 %v3006_v9 }
 0x43f   :  { %1368 = vmatpush1.msra.mxu0 %v2863_v8  ;;  %1439 = vmatpush1.msra.mxu1 %v3010_v26 }
 0x440   :  { %1369 = vmatprep.subr.mxu0 %v2866_v10  ;;  %1440 = vmatprep.subr.mxu1 %v3014_v30 }
 0x441   :  { %1370 = vmatpush1.msra.mxu0 %v2869_v11  ;;  %1441 = vmatpush1.msra.mxu1 %v3018_v34 }
 0x442   :  { %1371 = vmatprep.subr.mxu0 %v2872_v12  ;;  %1442 = vmatprep.subr.mxu1 %v3022_v38 }
 0x443   :  { %1372 = vmatpush1.msra.mxu0 %v3427_v13  ;;  %1443 = vmatpush1.msra.mxu1 %v3428_v36 }
 0x444   :  { %1373 = vmatprep.subr.mxu0 %v3429_v59  ;;  %1444 = vmatprep.subr.mxu1 %v3430_v56  ;;  %v1039_v56 = vld [vmem:[#allocation4 + $0x90] sm:$0xff] }
 0x445   :  { %1374 = vmatpush1.msra.mxu0 %v3431_v42  ;;  %1445 = vmatpush1.msra.mxu1 %v3432_v54  ;;  %v1040_v54 = vld [vmem:[#allocation4 + $0x98] sm:$0xff] }
 0x446   :  { %1375 = vmatprep.subr.mxu0 %v3433_v57  ;;  %1446 = vmatprep.subr.mxu1 %v3434_v44 }
 0x447   :  { %1376 = vmatpush1.msra.mxu0 %v3435_v55  ;;  %1447 = vmatpush1.msra.mxu1 %v3436_v17  ;;  %v3446_v17 = vld [vmem:[#allocation20_spill] sm:$0xff]  ;;  %v1038_v55 = vld [vmem:[#allocation4 + $0x88] sm:$0xff] }
 0x448   :  { %1377 = vmatprep.subr.mxu0 %v3437_v18  ;;  %1448 = vmatprep.subr.mxu1 %v3438_v19  ;;  %v3447_v18 = vld [vmem:[#allocation29_spill] sm:$0xff] }
 0x449   :  { %1378 = vmatpush1.msra.mxu0 %v3439_v0  ;;  %1449 = vmatpush1.msra.mxu1 %v3440_v16  ;;  %v1037_v19 = vld [vmem:[#allocation4 + $0x80] sm:$0xff] }
 0x44a   :  { %1379 = vmatprep.subr.mxu0 %v3441_v20  ;;  %1450 = vmatprep.subr.mxu1 %v3442_v40 }
 0x44b   :  { %1380 = vmatpush1.msra.mxu0 %v3443_v14  ;;  %1413 = vmatprep.mubr.f32.mxu0 %v3444_v21 }
 0x44c   :  { %1451 = vmatpush1.msra.mxu1 %v3445_v15  ;;  %1484 = vmatprep.mubr.f32.mxu1 %v3444_v21 }
 0x44d   :  { %1592 = vmatprep.subr.mxu0 %v3446_v17  ;;  %1663 = vmatprep.subr.mxu1 %v3447_v18 }
 0x4ec   :  { %v1172_v0 = vpop.f32.mrf.mxu0  ;;  %v1243_v40 = vpop.f32.mrf.mxu1 }
 0x4ed   :  { %v1248_v16 = vadd.f32 %v1172_v0, %v1037_v19  ;;  %v1250_v17 = vadd.f32 %v1243_v40, %v1039_v56  ;;  %v3462_v40 = vld [vmem:[#allocation19_spill] sm:$0xff] }
 0x4ee   :  { %v1174_v44 = vpop.f32.mrf.mxu0  ;;  %v1245_v42 = vpop.f32.mrf.mxu1 }
 0x4ef   :  { %v2134_v20 = vmul.f32 -1.442695, %v1248_v16  ;;  %v1249_v57 = vadd.f32 %v1174_v44, %v1038_v55  ;;  %v1251_v15 = vadd.f32 %v1245_v42, %v1040_v54 }
 0x4f1   :  { %2273 = vpow2.f32 %v2134_v20  ;;  %v2135_v14 = vmul.f32 -1.442695, %v1249_v57  ;;  %v2136_v21 = vmul.f32 -1.442695, %v1251_v15  ;;  %v3465_v15 = vmov 0.0  }
 0x4f3   :  { %2275 = vpow2.f32 %v2135_v14  ;;  %v3463_v14 = vld [vmem:[#allocation32_spill] sm:$0xff] }
 0x4f4   :  { %2277 = vpow2.f32 %v2136_v21  ;;  %v3464_v21 = vld [vmem:[#allocation28_spill] sm:$0xff] }
 0x4fe   :  { %v2274_v59 = vpop.eup %2273 }
 0x4ff   :  { %v1255_v36 = vadd.f32 1.0, %v2274_v59 }
 0x500   :  { %v2276_v18 = vpop.eup %2275 }
 0x501   :  { %2279 = vrcp.f32 %v1255_v36  ;;  %v1261_v13 = vadd.f32 1.0, %v2276_v18  ;;  %v2278_v19 = vpop.eup %2277  ;;  %v3459_v36 = vld [vmem:[#allocation14_spill] sm:$0xff]  ;;  %v3461_v18 = vld [vmem:[#allocation15_spill] sm:$0xff] }
 0x502   :  { %2281 = vtanh.f32 %v1250_v17  ;;  %v1268_v57 = vadd.f32 1.0, %v2278_v19  ;;  %v3460_v17 = vld [vmem:[#allocation27_spill] sm:$0xff]  ;;  %v3466_v19 = vld [vmem:[#allocation33_spill] sm:$0xff] }
 0x503   :  { %2283 = vrcp.f32 %v1261_v13  ;;  %v3458_v13 = vld [vmem:[#allocation18_spill] sm:$0xff] }
 0x504   :  { %2285 = vrcp.f32 %v1268_v57 }
 0x50e   :  { %v2280_v44 = vpop.eup %2279 }
 0x50f   :  { %v2282_v55 = vpop.eup %2281 }
 0x510   :  { %v2284_v0 = vpop.eup %2283  ;;  %v1273_v16 = vmul.f32 %v2282_v55, %v2280_v44  ;;  %v3467_v44 = vld [vmem:[#allocation20_spill] sm:$0xff]  ;;  %v3468_v55 = vld [vmem:[#allocation29_spill] sm:$0xff] }
 0x511   :  { %v1272_v20 = vmul.f32 %v2284_v0, %v3069_v63  ;;  %v2286_v59 = vpop.eup %2285  ;;  %v3456_v63 = vld [vmem:[#allocation25_spill] sm:$0xff] }
 0x512   :  { %v1280_v0 = vld [vmem:[#allocation4 + $0xa0] sm:$0xff] }
 0x513   :  { %v3139_v42 = vadd.f32 %v1273_v16, %v1272_v20  ;;  %v1281_v16 = vld [vmem:[#allocation4 + $0xa8] sm:$0xff] }
 0x515   :  { %2287 = vtanh.f32 %v3139_v42 }
 0x522   :  { %v2288_v56 = vpop.eup %2287 }
 0x523   :  { %v1276_v54 = vmul.f32 %v2288_v56, %v2286_v59 }
 0x525   :  { %1414 = vmatmul.mubr.f32.vlgmr.msra.gmra.mxu0 %v1276_v54  ;;  %1485 = vmatmul.mubr.f32.vlgmr.msra.gmra.mxu1 %v1276_v54 }
 0x526   :  { %1593 = vmatpush1.msra.mxu0 %v2916_v52  ;;  %1664 = vmatpush1.msra.mxu1 %v2918_v58 }
 0x527   :  { %1594 = vmatprep.subr.mxu0 %v2922_v50  ;;  %1665 = vmatprep.subr.mxu1 %v2924_v60 }
 0x528   :  { %1595 = vmatpush1.msra.mxu0 %v2928_v61  ;;  %1666 = vmatpush1.msra.mxu1 %v2930_v62 }
 0x529   :  { %1596 = vmatprep.subr.mxu0 %v2934_v46  ;;  %1667 = vmatprep.subr.mxu1 %v2936_v1 }
 0x52a   :  { %1597 = vmatpush1.msra.mxu0 %v2940_v24  ;;  %1668 = vmatpush1.msra.mxu1 %v2942_v48 }
 0x52b   :  { %1598 = vmatprep.subr.mxu0 %v2946_v28  ;;  %1669 = vmatprep.subr.mxu1 %v2948_v32 }
 0x52c   :  { %1599 = vmatpush1.msra.mxu0 %v2952_v2  ;;  %1670 = vmatpush1.msra.mxu1 %v2954_v22 }
 0x52d   :  { %1600 = vmatprep.subr.mxu0 %v2958_v23  ;;  %1671 = vmatprep.subr.mxu1 %v2960_v25 }
 0x52e   :  { %1601 = vmatpush1.msra.mxu0 %v2964_v27  ;;  %1672 = vmatpush1.msra.mxu1 %v2966_v29 }
 0x52f   :  { %1602 = vmatprep.subr.mxu0 %v2970_v31  ;;  %1673 = vmatprep.subr.mxu1 %v2972_v33 }
 0x530   :  { %1603 = vmatpush1.msra.mxu0 %v2976_v35  ;;  %1674 = vmatpush1.msra.mxu1 %v2978_v37 }
 0x531   :  { %1604 = vmatprep.subr.mxu0 %v2982_v39  ;;  %1675 = vmatprep.subr.mxu1 %v2984_v41 }
 0x532   :  { %1605 = vmatpush1.msra.mxu0 %v2988_v43  ;;  %1676 = vmatpush1.msra.mxu1 %v2990_v45 }
 0x533   :  { %1606 = vmatprep.subr.mxu0 %v2850_v3  ;;  %1677 = vmatprep.subr.mxu1 %v2994_v47  ;;  %v3448_v3 = vld [vmem:[#allocation21_spill] sm:$0xff] }
 0x534   :  { %1607 = vmatpush1.msra.mxu0 %v2852_v4  ;;  %1678 = vmatpush1.msra.mxu1 %v2996_v49  ;;  %v3449_v4 = vld [vmem:[#allocation22_spill] sm:$0xff] }
 0x535   :  { %1608 = vmatprep.subr.mxu0 %v2854_v5  ;;  %1679 = vmatprep.subr.mxu1 %v2998_v51  ;;  %v3450_v5 = vld [vmem:[#allocation16_spill] sm:$0xff] }
 0x536   :  { %1609 = vmatpush1.msra.mxu0 %v2857_v6  ;;  %1680 = vmatpush1.msra.mxu1 %v3002_v53  ;;  %v3451_v6 = vld [vmem:[#allocation30_spill] sm:$0xff] }
 0x537   :  { %1610 = vmatprep.subr.mxu0 %v2860_v7  ;;  %1681 = vmatprep.subr.mxu1 %v3006_v9  ;;  %v3452_v7 = vld [vmem:[#allocation23_spill] sm:$0xff] }
 0x538   :  { %1611 = vmatpush1.msra.mxu0 %v2863_v8  ;;  %1682 = vmatpush1.msra.mxu1 %v3010_v26  ;;  %v3453_v8 = vld [vmem:[#allocation24_spill] sm:$0xff] }
 0x539   :  { %1612 = vmatprep.subr.mxu0 %v2866_v10  ;;  %1683 = vmatprep.subr.mxu1 %v3014_v30  ;;  %v3454_v10 = vld [vmem:[#allocation17_spill] sm:$0xff] }
 0x53a   :  { %1613 = vmatpush1.msra.mxu0 %v2869_v11  ;;  %1684 = vmatpush1.msra.mxu1 %v3018_v34  ;;  %v3455_v11 = vld [vmem:[#allocation31_spill] sm:$0xff] }
 0x53b   :  { %1614 = vmatprep.subr.mxu0 %v2872_v12  ;;  %1685 = vmatprep.subr.mxu1 %v3022_v38  ;;  %v3457_v12 = vld [vmem:[#allocation26_spill] sm:$0xff] }
 0x53c   :  { %1615 = vmatpush1.msra.mxu0 %v3448_v3  ;;  %1686 = vmatpush1.msra.mxu1 %v3449_v4 }
 0x53d   :  { %1616 = vmatprep.subr.mxu0 %v3450_v5  ;;  %1687 = vmatprep.subr.mxu1 %v3451_v6 }
 0x53e   :  { %1617 = vmatpush1.msra.mxu0 %v3452_v7  ;;  %1688 = vmatpush1.msra.mxu1 %v3453_v8  ;;  %v1283_v7 = vld [vmem:[#allocation4 + $0xb8] sm:$0xff] }
 0x53f   :  { %1618 = vmatprep.subr.mxu0 %v3454_v10  ;;  %1689 = vmatprep.subr.mxu1 %v3455_v11 }
 0x540   :  { %1619 = vmatpush1.msra.mxu0 %v3456_v63  ;;  %1690 = vmatpush1.msra.mxu1 %v3457_v12 }
 0x541   :  { %1620 = vmatprep.subr.mxu0 %v3458_v13  ;;  %1691 = vmatprep.subr.mxu1 %v3459_v36  ;;  %v1282_v13 = vld [vmem:[#allocation4 + $0xb0] sm:$0xff] }
 0x542   :  { %1621 = vmatpush1.msra.mxu0 %v3460_v17  ;;  %1692 = vmatpush1.msra.mxu1 %v3461_v18 }
 0x543   :  { %1622 = vmatprep.subr.mxu0 %v3462_v40  ;;  %1693 = vmatprep.subr.mxu1 %v3463_v14 }
 0x544   :  { %1623 = vmatpush1.msra.mxu0 %v3464_v21  ;;  %1656 = vmatprep.mubr.f32.mxu0 %v3465_v15 }
 0x545   :  { %1694 = vmatpush1.msra.mxu1 %v3466_v19  ;;  %1727 = vmatprep.mubr.f32.mxu1 %v3465_v15 }
 0x546   :  { %1835 = vmatprep.subr.mxu0 %v3467_v44  ;;  %1906 = vmatprep.subr.mxu1 %v3468_v55 }
 0x5e5   :  { %v1415_v57 = vpop.f32.mrf.mxu0  ;;  %v1486_v3 = vpop.f32.mrf.mxu1 }
 0x5e6   :  { %v1491_v20 = vadd.f32 %v1415_v57, %v1280_v0  ;;  %v1493_v21 = vadd.f32 %v1486_v3, %v1282_v13 }
 0x5e7   :  { %v1417_v59 = vpop.f32.mrf.mxu0  ;;  %v1488_v10 = vpop.f32.mrf.mxu1 }
 0x5e8   :  { %v2137_v56 = vmul.f32 -1.442695, %v1491_v20  ;;  %v1492_v54 = vadd.f32 %v1417_v59, %v1281_v16  ;;  %v1494_v63 = vadd.f32 %v1488_v10, %v1283_v7 }
 0x5ea   :  { %2289 = vpow2.f32 %v2137_v56  ;;  %v2138_v5 = vmul.f32 -1.442695, %v1492_v54  ;;  %v2139_v17 = vmul.f32 -1.442695, %v1494_v63 }
 0x5ec   :  { %2291 = vpow2.f32 %v2138_v5 }
 0x5ed   :  { %2293 = vpow2.f32 %v2139_v17 }
 0x5f7   :  { %v2290_v40 = vpop.eup %2289 }
 0x5f8   :  { %v1498_v44 = vadd.f32 1.0, %v2290_v40 }
 0x5f9   :  { %v2292_v55 = vpop.eup %2291 }
 0x5fa   :  { %2295 = vrcp.f32 %v1498_v44  ;;  %v1504_v19 = vadd.f32 1.0, %v2292_v55  ;;  %v2294_v0 = vpop.eup %2293  ;;  %v2026_v44 = vld [vmem:[#allocation9 + $0x70] sm:$0xff]  ;;  %v2025_v55 = vld [vmem:[#allocation9 + $0x68] sm:$0xff] }
 0x5fb   :  { %2297 = vtanh.f32 %v1493_v21  ;;  %v1511_v59 = vadd.f32 1.0, %v2294_v0  ;;  %v2027_v21 = vld [vmem:[#allocation9 + $0x78] sm:$0xff]  ;;  %v2024_v0 = vld [vmem:[#allocation9 + $0x60] sm:$0xff] }
 0x5fc   :  { %2299 = vrcp.f32 %v1504_v19 }
 0x5fd   :  { %2301 = vrcp.f32 %v1511_v59  ;;  %v2020_v59 = vld [vmem:[#allocation9 + $0x40] sm:$0xff] }
 0x607   :  { %v2296_v57 = vpop.eup %2295 }
 0x608   :  { %v2298_v16 = vpop.eup %2297 }
 0x609   :  { %v2300_v20 = vpop.eup %2299  ;;  %v1516_v56 = vmul.f32 %v2298_v16, %v2296_v57  ;;  %v2023_v57 = vld [vmem:[#allocation9 + $0x58] sm:$0xff]  ;;  %v2022_v16 = vld [vmem:[#allocation9 + $0x50] sm:$0xff] }
 0x60a   :  { %v1515_v54 = vmul.f32 %v2300_v20, %v3139_v42  ;;  %v2302_v3 = vpop.eup %2301  ;;  %v2021_v20 = vld [vmem:[#allocation9 + $0x48] sm:$0xff] }
 0x60c   :  { %v3209_v5 = vadd.f32 %v1516_v56, %v1515_v54  ;;  %v2019_v56 = vld [vmem:[#allocation9 + $0x38] sm:$0xff]  ;;  %v2018_v54 = vld [vmem:[#allocation9 + $0x30] sm:$0xff] }
 0x60e   :  { %2303 = vtanh.f32 %v3209_v5 }
 0x61b   :  { %v2304_v7 = vpop.eup %2303 }
 0x61c   :  { %v1519_v10 = vmul.f32 %v2304_v7, %v2302_v3  ;;  %v2016_v3 = vld [vmem:[#allocation9 + $0x20] sm:$0xff]  ;;  %v2015_v7 = vld [vmem:[#allocation9 + $0x18] sm:$0xff] }
 0x61e   :  { %1657 = vmatmul.mubr.f32.vlgmr.msra.gmra.mxu0 %v1519_v10  ;;  %1728 = vmatmul.mubr.f32.vlgmr.msra.gmra.mxu1 %v1519_v10  ;;  %v2014_v10 = vld [vmem:[#allocation9 + $0x10] sm:$0xff] }
 0x61f   :  { %1836 = vmatpush1.msra.mxu0 %v2916_v52  ;;  %1907 = vmatpush1.msra.mxu1 %v2918_v58  ;;  %v3469_v52 = vld [vmem:[#allocation33_spill] sm:$0xff]  ;;  %v1804_v58 = vld [vmem:[#allocation7 + $0x108] sm:$0xff] }
 0x620   :  { %1837 = vmatprep.subr.mxu0 %v2922_v50  ;;  %1908 = vmatprep.subr.mxu1 %v2924_v60  ;;  %v1803_v50 = vld [vmem:[#allocation7 + $0x100] sm:$0xff]  ;;  %v1800_v60 = vld [vmem:[#allocation7 + $0xe8] sm:$0xff] }
 0x621   :  { %1838 = vmatpush1.msra.mxu0 %v2928_v61  ;;  %1909 = vmatpush1.msra.mxu1 %v2930_v62  ;;  %v1799_v61 = vld [vmem:[#allocation7 + $0xe0] sm:$0xff]  ;;  %v1796_v62 = vld [vmem:[#allocation7 + $0xc8] sm:$0xff] }
 0x622   :  { %1839 = vmatprep.subr.mxu0 %v2934_v46  ;;  %1910 = vmatprep.subr.mxu1 %v2936_v1  ;;  %v1795_v46 = vld [vmem:[#allocation7 + $0xc0] sm:$0xff]  ;;  %v1792_v1 = vld [vmem:[#allocation7 + $0xa8] sm:$0xff] }
 0x623   :  { %1840 = vmatpush1.msra.mxu0 %v2940_v24  ;;  %1911 = vmatpush1.msra.mxu1 %v2942_v48  ;;  %v1791_v24 = vld [vmem:[#allocation7 + $0xa0] sm:$0xff]  ;;  %v1788_v48 = vld [vmem:[#allocation7 + $0x88] sm:$0xff] }
 0x624   :  { %1841 = vmatprep.subr.mxu0 %v2946_v28  ;;  %1912 = vmatprep.subr.mxu1 %v2948_v32  ;;  %v1787_v28 = vld [vmem:[#allocation7 + $0x80] sm:$0xff]  ;;  %v1784_v32 = vld [vmem:[#allocation7 + $0x68] sm:$0xff] }
 0x625   :  { %1842 = vmatpush1.msra.mxu0 %v2952_v2  ;;  %1913 = vmatpush1.msra.mxu1 %v2954_v22  ;;  %v1783_v2 = vld [vmem:[#allocation7 + $0x60] sm:$0xff]  ;;  %v1780_v22 = vld [vmem:[#allocation7 + $0x48] sm:$0xff] }
 0x626   :  { %1843 = vmatprep.subr.mxu0 %v2958_v23  ;;  %1914 = vmatprep.subr.mxu1 %v2960_v25  ;;  %v1779_v23 = vld [vmem:[#allocation7 + $0x40] sm:$0xff]  ;;  %v1776_v25 = vld [vmem:[#allocation7 + $0x28] sm:$0xff] }
 0x627   :  { %1844 = vmatpush1.msra.mxu0 %v2964_v27  ;;  %1915 = vmatpush1.msra.mxu1 %v2966_v29  ;;  %v1775_v27 = vld [vmem:[#allocation7 + $0x20] sm:$0xff]  ;;  %v1772_v29 = vld [vmem:[#allocation7 + $0x8] sm:$0xff] }
 0x628   :  { %1845 = vmatprep.subr.mxu0 %v2970_v31  ;;  %1916 = vmatprep.subr.mxu1 %v2972_v33  ;;  %v1771_v31 = vld [vmem:[#allocation7] sm:$0xff] }
 0x629   :  { %1846 = vmatpush1.msra.mxu0 %v2976_v35  ;;  %1917 = vmatpush1.msra.mxu1 %v2978_v37  ;;  %v1523_v33 = vld [vmem:[#allocation4 + $0xc0] sm:$0xff]  ;;  %v1524_v37 = vld [vmem:[#allocation4 + $0xc8] sm:$0xff] }
 0x62a   :  { %1847 = vmatprep.subr.mxu0 %v2982_v39  ;;  %1918 = vmatprep.subr.mxu1 %v2984_v41 }
 0x62b   :  { %1848 = vmatpush1.msra.mxu0 %v2988_v43  ;;  %1919 = vmatpush1.msra.mxu1 %v2990_v45 }
 0x62c   :  { %1920 = vmatprep.subr.mxu1 %v2994_v47  ;;  %1899 = vmatprep.mubr.f32.mxu0 %v3465_v15 }
 0x62d   :  { %1921 = vmatpush1.msra.mxu1 %v2996_v49  ;;  %1970 = vmatprep.mubr.f32.mxu1 %v3465_v15 }
 0x62e   :  { %1922 = vmatprep.subr.mxu1 %v2998_v51  ;;  %1849 = vmatprep.subr.mxu0 %v1804_v58  ;;  %v1526_v51 = vld [vmem:[#allocation4 + $0xd8] sm:$0xff]  ;;  %v2012_v58 = vld [vmem:[#allocation9] sm:$0xff] }
 0x62f   :  { %1923 = vmatpush1.msra.mxu1 %v3002_v53  ;;  %1850 = vmatpush1.msra.mxu0 %v1803_v50  ;;  %v1766_v50 = vld [vmem:[#allocation4 + $0xe0] sm:$0xff] }
 0x630   :  { %1924 = vmatprep.subr.mxu1 %v3006_v9  ;;  %1851 = vmatprep.subr.mxu0 %v1800_v60 }
 0x631   :  { %1925 = vmatpush1.msra.mxu1 %v3010_v26  ;;  %1852 = vmatpush1.msra.mxu0 %v1799_v61  ;;  %v1525_v26 = vld [vmem:[#allocation4 + $0xd0] sm:$0xff]  ;;  %v1767_v61 = vld [vmem:[#allocation4 + $0xe8] sm:$0xff] }
 0x632   :  { %1926 = vmatprep.subr.mxu1 %v3014_v30  ;;  %1853 = vmatprep.subr.mxu0 %v1796_v62 }
 0x633   :  { %1927 = vmatpush1.msra.mxu1 %v3018_v34  ;;  %1854 = vmatpush1.msra.mxu0 %v1795_v46 }
 0x634   :  { %1928 = vmatprep.subr.mxu1 %v3022_v38  ;;  %1855 = vmatprep.subr.mxu0 %v1792_v1 }
 0x635   :  { %1929 = vmatpush1.msra.mxu1 %v3449_v4  ;;  %1856 = vmatpush1.msra.mxu0 %v1791_v24 }
 0x636   :  { %1930 = vmatprep.subr.mxu1 %v3451_v6  ;;  %1857 = vmatprep.subr.mxu0 %v1788_v48 }
 0x637   :  { %1931 = vmatpush1.msra.mxu1 %v3453_v8  ;;  %1858 = vmatpush1.msra.mxu0 %v1787_v28 }
 0x638   :  { %1932 = vmatprep.subr.mxu1 %v3455_v11  ;;  %1859 = vmatprep.subr.mxu0 %v1784_v32  ;;  %v1769_v32 = vld [vmem:[#allocation4 + $0xf8] sm:$0xff] }
 0x639   :  { %1933 = vmatpush1.msra.mxu1 %v3457_v12  ;;  %1860 = vmatpush1.msra.mxu0 %v1783_v2 }
 0x63a   :  { %1934 = vmatprep.subr.mxu1 %v3459_v36  ;;  %1861 = vmatprep.subr.mxu0 %v1780_v22 }
 0x63b   :  { %1935 = vmatpush1.msra.mxu1 %v3461_v18  ;;  %1862 = vmatpush1.msra.mxu0 %v1779_v23  ;;  %v1768_v23 = vld [vmem:[#allocation4 + $0xf0] sm:$0xff] }
 0x63c   :  { %1936 = vmatprep.subr.mxu1 %v3463_v14  ;;  %1863 = vmatprep.subr.mxu0 %v1776_v25 }
 0x63d   :  { %1937 = vmatpush1.msra.mxu1 %v3469_v52  ;;  %1864 = vmatpush1.msra.mxu0 %v1775_v27  ;;  %v2013_v52 = vld [vmem:[#allocation9 + $0x8] sm:$0xff] }
 0x63e   :  { %1865 = vmatprep.subr.mxu0 %v1772_v29 }
 0x63f   :  { %1866 = vmatpush1.msra.mxu0 %v1771_v31 }
 0x640   :  { %2164 = vmatprep.subr.mxu0 %v3465_v15 }
 0x6de   :  { %v1658_v35 = vpop.f32.mrf.mxu0  ;;  %v1729_v47 = vpop.f32.mrf.mxu1 }
 0x6df   :  { %v1734_v39 = vadd.f32 %v1658_v35, %v1523_v33  ;;  %v1736_v38 = vadd.f32 %v1729_v47, %v1525_v26  ;;  %v2146_v26 = vld [vmem:[%s3289_s3] ss:$0 sm:$0xff] }
 0x6e0   :  { %v1660_v41 = vpop.f32.mrf.mxu0  ;;  %v1731_v53 = vpop.f32.mrf.mxu1 }
 0x6e1   :  { %v2140_v43 = vmul.f32 -1.442695, %v1734_v39  ;;  %v1735_v45 = vadd.f32 %v1660_v41, %v1524_v37  ;;  %v1737_v9 = vadd.f32 %v1731_v53, %v1526_v51 }
 0x6e3   :  { %2305 = vpow2.f32 %v2140_v43  ;;  %v2141_v49 = vmul.f32 -1.442695, %v1735_v45  ;;  %v2142_v30 = vmul.f32 -1.442695, %v1737_v9 }
 0x6e5   :  { %2307 = vpow2.f32 %v2141_v49 }
 0x6e6   :  { %2309 = vpow2.f32 %v2142_v30 }
 0x6f0   :  { %v2306_v34 = vpop.eup %2305 }
 0x6f1   :  { %v1741_v42 = vadd.f32 1.0, %v2306_v34 }
 0x6f2   :  { %v2308_v4 = vpop.eup %2307 }
 0x6f3   :  { %2311 = vrcp.f32 %v1741_v42  ;;  %v1747_v6 = vadd.f32 1.0, %v2308_v4  ;;  %v2310_v8 = vpop.eup %2309 }
 0x6f4   :  { %2313 = vtanh.f32 %v1736_v38  ;;  %v1754_v18 = vadd.f32 1.0, %v2310_v8 }
 0x6f5   :  { %2315 = vrcp.f32 %v1747_v6 }
 0x6f6   :  { %2317 = vrcp.f32 %v1754_v18 }
 0x700   :  { %v2312_v11 = vpop.eup %2311 }
 0x701   :  { %v2314_v12 = vpop.eup %2313 }
 0x702   :  { %v2316_v36 = vpop.eup %2315  ;;  %v1759_v14 = vmul.f32 %v2314_v12, %v2312_v11 }
 0x703   :  { %v1758_v19 = vmul.f32 %v2316_v36, %v3209_v5  ;;  %v2318_v13 = vpop.eup %2317  ;;  %v2017_v5 = vld [vmem:[#allocation9 + $0x28] sm:$0xff] }
 0x705   :  { %v3260_v63 = vadd.f32 %v1759_v14, %v1758_v19 }
 0x707   :  { %2319 = vtanh.f32 %v3260_v63 }
 0x714   :  { %v2320_v17 = vpop.eup %2319 }
 0x715   :  { %v1762_v40 = vmul.f32 %v2320_v17, %v2318_v13 }
 0x717   :  { %1900 = vmatmul.mubr.f32.vlgmr.msra.gmra.mxu0 %v1762_v40  ;;  %1971 = vmatmul.mubr.f32.vlgmr.msra.gmra.mxu1 %v1762_v40 }
 0x718   :  { %2165 = vmatpush3.msra.mxu0 %v2027_v21  ;;  %2196 = vmatprep.mubr.msk.f32.mxu0 %vm2431_vm0, %v3465_v15 }
 0x719   :  { %2166 = vmatprep.subr.mxu0 %v3465_v15 }
 0x71a   :  { %2167 = vmatpush3.msra.mxu0 %v2026_v44 }
 0x71b   :  { %2168 = vmatprep.subr.mxu0 %v3465_v15 }
 0x71c   :  { %2169 = vmatpush3.msra.mxu0 %v2025_v55 }
 0x71d   :  { %2170 = vmatprep.subr.mxu0 %v3465_v15 }
 0x71e   :  { %2171 = vmatpush3.msra.mxu0 %v2024_v0 }
 0x71f   :  { %2172 = vmatprep.subr.mxu0 %v3465_v15 }
 0x720   :  { %2173 = vmatpush3.msra.mxu0 %v2023_v57 }
 0x721   :  { %2174 = vmatprep.subr.mxu0 %v3465_v15 }
 0x722   :  { %2175 = vmatpush3.msra.mxu0 %v2022_v16 }
 0x723   :  { %2176 = vmatprep.subr.mxu0 %v3465_v15 }
 0x724   :  { %2177 = vmatpush3.msra.mxu0 %v2021_v20 }
 0x725   :  { %2178 = vmatprep.subr.mxu0 %v3465_v15 }
 0x726   :  { %2179 = vmatpush3.msra.mxu0 %v2020_v59 }
 0x727   :  { %2180 = vmatprep.subr.mxu0 %v3465_v15 }
 0x728   :  { %2181 = vmatpush3.msra.mxu0 %v2019_v56 }
 0x729   :  { %2182 = vmatprep.subr.mxu0 %v3465_v15 }
 0x72a   :  { %2183 = vmatpush3.msra.mxu0 %v2018_v54 }
 0x72b   :  { %2184 = vmatprep.subr.mxu0 %v3465_v15 }
 0x72c   :  { %2185 = vmatpush3.msra.mxu0 %v2017_v5 }
 0x72d   :  { %2186 = vmatprep.subr.mxu0 %v3465_v15 }
 0x72e   :  { %2187 = vmatpush3.msra.mxu0 %v2016_v3 }
 0x72f   :  { %2188 = vmatprep.subr.mxu0 %v3465_v15 }
 0x730   :  { %2189 = vmatpush3.msra.mxu0 %v2015_v7 }
 0x731   :  { %2190 = vmatprep.subr.mxu0 %v3465_v15 }
 0x732   :  { %2191 = vmatpush3.msra.mxu0 %v2014_v10 }
 0x733   :  { %2192 = vmatprep.subr.mxu0 %v3465_v15 }
 0x734   :  { %2193 = vmatpush3.msra.mxu0 %v2013_v52 }
 0x735   :  { %2194 = vmatprep.subr.mxu0 %v3465_v15 }
 0x736   :  { %2195 = vmatpush3.msra.mxu0 %v2012_v58 }
 0x7d7   :  { %v1901_v60 = vpop.f32.mrf.mxu0  ;;  %v1972_v48 = vpop.f32.mrf.mxu1 }
 0x7d8   :  { %v1977_v62 = vadd.f32 %v1901_v60, %v1766_v50  ;;  %v1979_v29 = vadd.f32 %v1972_v48, %v1768_v23 }
 0x7d9   :  { %v1903_v46 = vpop.f32.mrf.mxu0  ;;  %v1974_v2 = vpop.f32.mrf.mxu1 }
 0x7da   :  { %v2143_v1 = vmul.f32 -1.442695, %v1977_v62  ;;  %v1978_v24 = vadd.f32 %v1903_v46, %v1767_v61  ;;  %v1980_v22 = vadd.f32 %v1974_v2, %v1769_v32 }
 0x7dc   :  { %2321 = vpow2.f32 %v2143_v1  ;;  %v2144_v28 = vmul.f32 -1.442695, %v1978_v24  ;;  %v2145_v25 = vmul.f32 -1.442695, %v1980_v22 }
 0x7de   :  { %2323 = vpow2.f32 %v2144_v28 }
 0x7df   :  { %2325 = vpow2.f32 %v2145_v25 }
 0x7e9   :  { %v2322_v27 = vpop.eup %2321 }
 0x7ea   :  { %v1984_v15 = vadd.f32 1.0, %v2322_v27 }
 0x7eb   :  { %v2324_v31 = vpop.eup %2323 }
 0x7ec   :  { %2327 = vrcp.f32 %v1984_v15  ;;  %v1990_v33 = vadd.f32 1.0, %v2324_v31  ;;  %v2326_v35 = vpop.eup %2325 }
 0x7ed   :  { %2329 = vtanh.f32 %v1979_v29  ;;  %v1997_v43 = vadd.f32 1.0, %v2326_v35 }
 0x7ee   :  { %2331 = vrcp.f32 %v1990_v33 }
 0x7ef   :  { %2333 = vrcp.f32 %v1997_v43 }
 0x7f9   :  { %v2328_v37 = vpop.eup %2327 }
 0x7fa   :  { %v2330_v39 = vpop.eup %2329 }
 0x7fb   :  { %v2332_v41 = vpop.eup %2331  ;;  %v2002_v45 = vmul.f32 %v2330_v39, %v2328_v37 }
 0x7fc   :  { %v2001_v47 = vmul.f32 %v2332_v41, %v3260_v63  ;;  %v2334_v51 = vpop.eup %2333 }
 0x7fe   :  { %v2003_v49 = vadd.f32 %v2002_v45, %v2001_v47 }
 0x800   :  { %2335 = vtanh.f32 %v2003_v49 }
 0x80d   :  { %v2336_v53 = vpop.eup %2335 }
 0x80e   :  { %v2005_v9 = vmul.f32 %v2336_v53, %v2334_v51 }
 0x810   :  { %2197 = vmatmul.mubr.f32.vlgmr.msra.gmra.mxu0 %v2005_v9 }
 0x8d0   :  { %v2101_v30 = vpop.f32.mrf.mxu0 }
 0x8d1   :  { %v2102_v34 = vadd.f32 %v2146_v26, %v2101_v30 }
 0x8d2   :  { %v2198_v38 = vpop.f32.mrf.mxu0 }
 0x8d3   :  { %2105 = vst [vmem:[#allocation10] sm:$0xff] %v2102_v34 }
 0x8d4   :  { %2408 = shalt.err (!%p2405_p5)
}
 0x8d5   :  { %2115 = dma.vmem_to_hbm [thread:$0]  %s2113_s8, 128, %s3290_s4, [#allocation6]  }
 0x8d6   :  { %2421 = dma.done.wait [#allocation6], 128  }
 0x8d7   :  { %2422 = vsyncadd [#allocation6], 4294967168 }
 0x8d8   :  { %2119 = vsyncpa [#allocation5], 1 }
 0x8d9   :  { %2120 = vsyncpa [#allocation8], 1 }
 0x8da   :  { %2121 = vsyncpa [#allocation6], 1 }

</bundles_post_ra>
